<compile_context>
chip_gen: v6e
topology: v6e:2x2x1
jax: 0.10.0
libtpu: 0.0.40
codegen_flags: <defaults>
</compile_context>

<pallas_src>
import functools

import jax
import jax.numpy as jnp
from jax.experimental import pallas as pl
from jax.experimental.pallas import tpu as pltpu  # noqa: F401  (TPU backend)


# --------------------------- Kernel A: conv1 stage -------------------------- #

def _conv1_pool_kernel(p0_ref, p1_ref, p2_ref, p3_ref, w_ref, b_ref, o_ref):
    # p*_ref: (25, M) transposed im2col patches, one per 2x2 pool position.
    # w_ref: (6, 25) flattened conv1 weight, b_ref: (6, 1).
    w = w_ref[...]

    def dot(p_ref):
        return jnp.dot(w, p_ref[...], preferred_element_type=jnp.float32)

    z = jnp.maximum(jnp.maximum(dot(p0_ref), dot(p1_ref)),
                    jnp.maximum(dot(p2_ref), dot(p3_ref)))      # max-pool (pre-bias)
    o_ref[...] = jnp.maximum(z + b_ref[...], 0.0)               # bias + ReLU


def conv1_pool(patches, w1, b1):
    """patches: 4 arrays (25, M) f32; w1: (6,1,5,5); b1: (6,). Returns (6, M)."""
    M = patches[0].shape[1]
    w1t = w1.reshape(6, 25)
    b1c = b1.reshape(6, 1)
    spec2 = lambda shp: pl.BlockSpec(shp, lambda i: (0, 0))
    return pl.pallas_call(
        _conv1_pool_kernel,
        out_shape=jax.ShapeDtypeStruct((6, M), jnp.float32),
        grid=(1,),
        in_specs=[spec2((25, M))] * 4 + [spec2((6, 25)), spec2((6, 1))],
        out_specs=spec2((6, M)),
    )(*patches, w1t, b1c)


# --------------------- Kernel B: conv2 stage + FC head ---------------------- #

def _conv2_fc_kernel(q0_ref, q1_ref, q2_ref, q3_ref, w2_ref, b2_ref,
                     wf1_ref, bf1_ref, wf2_ref, bf2_ref, wf3_ref, bf3_ref,
                     o_ref, *, batch):
    w2 = w2_ref[...]                                            # (150, 16)

    def dot(q_ref):
        return jnp.dot(q_ref[...], w2, preferred_element_type=jnp.float32)

    z = jnp.maximum(jnp.maximum(dot(q0_ref), dot(q1_ref)),
                    jnp.maximum(dot(q2_ref), dot(q3_ref)))      # (16*N, 16) pooled
    y = jnp.maximum(z + b2_ref[...], 0.0)                       # conv2+bias+ReLU+pool

    # Flatten + FC1: rows of y are spatial-major (s*N + n), so FC1 is a sum of
    # 16 per-spatial-position (N,16)@(16,120) matmuls with static slices.
    acc = jnp.zeros((batch, 120), jnp.float32)
    for s in range(16):
        acc = acc + jnp.dot(y[s * batch:(s + 1) * batch, :], wf1_ref[s],
                            preferred_element_type=jnp.float32)
    h1 = jnp.maximum(acc + bf1_ref[...], 0.0)                   # (N, 120)
    h2 = jnp.maximum(
        jnp.dot(h1, wf2_ref[...], preferred_element_type=jnp.float32) + bf2_ref[...],
        0.0)                                                    # (N, 84)
    o_ref[...] = (jnp.dot(h2, wf3_ref[...], preferred_element_type=jnp.float32)
                  + bf3_ref[...])                               # (N, 10)


def conv2_fc(qs, params, batch):
    w2 = params["c2_w"].reshape(16, 150).T                      # (150, 16), (c,i,j) rows
    b2 = params["c2_b"].reshape(1, 16)
    # fc1 weight permuted so our (h,w)-major-rows / channel-columns conv2 output
    # matches torch.nn.Flatten's (c, h, w) feature order: wf1[s, c, o].
    wf1 = params["f1_w"].reshape(120, 16, 4, 4).transpose(2, 3, 1, 0).reshape(16, 16, 120)
    bf1 = params["f1_b"].reshape(1, 120)
    wf2 = params["f2_w"].T                                      # (120, 84)
    bf2 = params["f2_b"].reshape(1, 84)
    wf3 = params["f3_w"].T                                      # (84, 10)
    bf3 = params["f3_b"].reshape(1, 10)

    R = 16 * batch
    s2 = lambda shp: pl.BlockSpec(shp, lambda i: (0, 0))
    s3 = lambda shp: pl.BlockSpec(shp, lambda i: (0, 0, 0))
    kern = functools.partial(_conv2_fc_kernel, batch=batch)
    return pl.pallas_call(
        kern,
        out_shape=jax.ShapeDtypeStruct((batch, 10), jnp.float32),
        grid=(1,),
        in_specs=[s2((R, 150))] * 4
        + [s2((150, 16)), s2((1, 16)),
           s3((16, 16, 120)), s2((1, 120)),
           s2((120, 84)), s2((1, 84)),
           s2((84, 10)), s2((1, 10))],
        out_specs=s2((batch, 10)),
    )(*qs, w2, b2, wf1, bf1, wf2, bf2, wf3, bf3)


# ----------------------------- wrapper glue (XLA) ---------------------------- #

def _conv1_patches_T(x2, di, dj):
    """x2: (N, 28, 28) -> (25, N*144) transposed patches for pool offset (di,dj).
    Rows ordered (i, j) to match c1_w.reshape(6, 25); columns (n, ph, pw)."""
    n = x2.shape[0]
    cols = []
    for i in range(5):
        for j in range(5):
            cols.append(x2[:, di + i:di + i + 24:2, dj + j:dj + j + 24:2])  # (N,12,12)
    p = jnp.stack(cols, axis=0)                                  # (25, N, 12, 12)
    return p.reshape(25, n * 144)


def _conv2_patches(p1, di, dj):
    """p1: (6, N, 12, 12) pooled conv1 output (C, N, H, W) -> (16*N, 150).
    Rows spatial-major (s = ph*4 + pw, then n); columns (c, i, j) to match
    c2_w.reshape(16, 150)."""
    n = p1.shape[1]
    cols = []
    for i in range(5):
        for j in range(5):
            cols.append(p1[:, :, di + i:di + i + 8:2, dj + j:dj + j + 8:2])  # (6,N,4,4)
    q = jnp.stack(cols, axis=1)                                  # (6, 25, N, 4, 4)
    q = q.transpose(3, 4, 2, 0, 1)                               # (4, 4, N, 6, 25)
    return q.reshape(16 * n, 150)


# ------------------------------- LeNet5 model -------------------------------- #

def init_params(key):
    """Deterministic synthetic init (PyTorch-style uniform(-1/sqrt(fan_in), ...))."""
    ks = jax.random.split(key, 10)

    def unif(k, shape, fan_in):
        bound = 1.0 / jnp.sqrt(fan_in)
        return jax.random.uniform(k, shape, jnp.float32, -bound, bound)

    return {
        "c1_w": unif(ks[0], (6, 1, 5, 5), 1 * 5 * 5),
        "c1_b": unif(ks[1], (6,), 1 * 5 * 5),
        "c2_w": unif(ks[2], (16, 6, 5, 5), 6 * 5 * 5),
        "c2_b": unif(ks[3], (16,), 6 * 5 * 5),
        "f1_w": unif(ks[4], (120, 16 * 4 * 4), 16 * 4 * 4),
        "f1_b": unif(ks[5], (120,), 16 * 4 * 4),
        "f2_w": unif(ks[6], (84, 120), 120),
        "f2_b": unif(ks[7], (84,), 120),
        "f3_w": unif(ks[8], (10, 84), 84),
        "f3_b": unif(ks[9], (10,), 84),
    }


def lenet5_forward(params, x):
    n = x.shape[0]
    x2 = x[:, 0]                                                 # (N, 28, 28)
    # Stage 1: conv1 + ReLU + pool (one fused kernel, lane-dense (6, N*144) out).
    p = [_conv1_patches_T(x2, di, dj) for di in (0, 1) for dj in (0, 1)]
    a = conv1_pool(p, params["c1_w"], params["c1_b"])            # (6, N*144)
    p1 = a.reshape(6, n, 12, 12)
    # Stage 2: conv2 + ReLU + pool + flatten + FC head (one fused kernel).
    q = [_conv2_patches(p1, di, dj) for di in (0, 1) for dj in (0, 1)]
    return conv2_fc(q, params, n)                                # (N, 10)


# -------------------------- pure-JAX reference check ------------------------- #

def _reference_forward(params, x):
    hp = jax.lax.Precision.HIGHEST
    dn = ("NCHW", "OIHW", "NCHW")
    y = jax.lax.conv_general_dilated(x, params["c1_w"], (1, 1), "VALID",
                                     dimension_numbers=dn, precision=hp)
    y = jax.nn.relu(y + params["c1_b"].reshape(1, 6, 1, 1))
    y = jax.lax.reduce_window(y, -jnp.inf, jax.lax.max, (1, 1, 2, 2), (1, 1, 2, 2), "VALID")
    y = jax.lax.conv_general_dilated(y, params["c2_w"], (1, 1), "VALID",
                                     dimension_numbers=dn, precision=hp)
    y = jax.nn.relu(y + params["c2_b"].reshape(1, 16, 1, 1))
    y = jax.lax.reduce_window(y, -jnp.inf, jax.lax.max, (1, 1, 2, 2), (1, 1, 2, 2), "VALID")
    y = y.reshape(y.shape[0], -1)
    y = jax.nn.relu(jnp.dot(y, params["f1_w"].T, precision=hp) + params["f1_b"])
    y = jax.nn.relu(jnp.dot(y, params["f2_w"].T, precision=hp) + params["f2_b"])
    return jnp.dot(y, params["f3_w"].T, precision=hp) + params["f3_b"]


if __name__ == "__main__":
    key = jax.random.PRNGKey(0)
    k_params, k_x = jax.random.split(key)
    params = init_params(k_params)
    # LeNet5's FC head (16*4*4) fixes the input at 1x28x28.
    x = jax.random.normal(k_x, (2, 1, 28, 28), dtype=jnp.float32)

    out = jax.block_until_ready(jax.jit(lenet5_forward)(params, x))
    assert out.shape == (2, 10) and out.dtype == jnp.float32

    ref = jax.block_until_ready(jax.jit(_reference_forward)(params, x))
    err = float(jnp.max(jnp.abs(out - ref)))
    assert jnp.allclose(out, ref, rtol=1e-2, atol=1e-2), f"max abs err {err}"
    print("KERNEL_OK")
</pallas_src>

<mosaic_0001>
module attributes {stable_mosaic.version = 11 : i64} {
  func.func @_conv1_pool_kernel(%arg0: i32, %arg1: memref<25x288xf32, #tpu.memory_space<vmem>>, %arg2: memref<25x288xf32, #tpu.memory_space<vmem>>, %arg3: memref<25x288xf32, #tpu.memory_space<vmem>>, %arg4: memref<25x288xf32, #tpu.memory_space<vmem>>, %arg5: memref<6x25xf32, #tpu.memory_space<vmem>>, %arg6: memref<6x1xf32, #tpu.memory_space<vmem>>, %arg7: memref<6x288xf32, #tpu.memory_space<vmem>>) attributes {dimension_semantics = [#tpu.dimension_semantics<arbitrary>], iteration_bounds = array<i64: 1>, scalar_prefetch = 0 : i64, scratch_operands = 0 : i64, tpu.core_type = #tpu.core_type<tc>, window_params = [{pipeline_mode = #tpu.pipeline_mode<synchronous>, transform_indices = @transform_0, window_bounds = array<i64: 25, 288>}, {pipeline_mode = #tpu.pipeline_mode<synchronous>, transform_indices = @transform_1, window_bounds = array<i64: 25, 288>}, {pipeline_mode = #tpu.pipeline_mode<synchronous>, transform_indices = @transform_2, window_bounds = array<i64: 25, 288>}, {pipeline_mode = #tpu.pipeline_mode<synchronous>, transform_indices = @transform_3, window_bounds = array<i64: 25, 288>}, {pipeline_mode = #tpu.pipeline_mode<synchronous>, transform_indices = @transform_4, window_bounds = array<i64: 6, 25>}, {pipeline_mode = #tpu.pipeline_mode<synchronous>, transform_indices = @transform_5, window_bounds = array<i64: 6, 1>}, {pipeline_mode = #tpu.pipeline_mode<synchronous>, transform_indices = @transform_6, window_bounds = array<i64: 6, 288>}]} {
    %c0 = arith.constant 0 : index
    %c0_0 = arith.constant 0 : index
    %0 = vector.load %arg5[%c0, %c0_0] : memref<6x25xf32, #tpu.memory_space<vmem>>, vector<6x25xf32>
    %c0_1 = arith.constant 0 : index
    %c0_2 = arith.constant 0 : index
    %1 = vector.load %arg1[%c0_1, %c0_2] : memref<25x288xf32, #tpu.memory_space<vmem>>, vector<25x288xf32>
    %cst = arith.constant dense<0.000000e+00> : vector<6x288xf32>
    %2 = tpu.matmul %0, %1, %cst {dimension_numbers = #tpu.dot_dimension_numbers<[1], [0], [0], [1], [0, 0, 1, 1], [], []>} : vector<6x25xf32>, vector<25x288xf32>, vector<6x288xf32> -> vector<6x288xf32>
    %c0_3 = arith.constant 0 : index
    %c0_4 = arith.constant 0 : index
    %3 = vector.load %arg2[%c0_3, %c0_4] : memref<25x288xf32, #tpu.memory_space<vmem>>, vector<25x288xf32>
    %cst_5 = arith.constant dense<0.000000e+00> : vector<6x288xf32>
    %4 = tpu.matmul %0, %3, %cst_5 {dimension_numbers = #tpu.dot_dimension_numbers<[1], [0], [0], [1], [0, 0, 1, 1], [], []>} : vector<6x25xf32>, vector<25x288xf32>, vector<6x288xf32> -> vector<6x288xf32>
    %5 = arith.maximumf %2, %4 : vector<6x288xf32>
    %c0_6 = arith.constant 0 : index
    %c0_7 = arith.constant 0 : index
    %6 = vector.load %arg3[%c0_6, %c0_7] : memref<25x288xf32, #tpu.memory_space<vmem>>, vector<25x288xf32>
    %cst_8 = arith.constant dense<0.000000e+00> : vector<6x288xf32>
    %7 = tpu.matmul %0, %6, %cst_8 {dimension_numbers = #tpu.dot_dimension_numbers<[1], [0], [0], [1], [0, 0, 1, 1], [], []>} : vector<6x25xf32>, vector<25x288xf32>, vector<6x288xf32> -> vector<6x288xf32>
    %c0_9 = arith.constant 0 : index
    %c0_10 = arith.constant 0 : index
    %8 = vector.load %arg4[%c0_9, %c0_10] : memref<25x288xf32, #tpu.memory_space<vmem>>, vector<25x288xf32>
    %cst_11 = arith.constant dense<0.000000e+00> : vector<6x288xf32>
    %9 = tpu.matmul %0, %8, %cst_11 {dimension_numbers = #tpu.dot_dimension_numbers<[1], [0], [0], [1], [0, 0, 1, 1], [], []>} : vector<6x25xf32>, vector<25x288xf32>, vector<6x288xf32> -> vector<6x288xf32>
    %10 = arith.maximumf %7, %9 : vector<6x288xf32>
    %11 = arith.maximumf %5, %10 : vector<6x288xf32>
    %c0_12 = arith.constant 0 : index
    %c0_13 = arith.constant 0 : index
    %12 = vector.load %arg6[%c0_12, %c0_13] : memref<6x1xf32, #tpu.memory_space<vmem>>, vector<6x1xf32>
    %13 = vector.broadcast %12 : vector<6x1xf32> to vector<6x288xf32>
    %14 = arith.addf %11, %13 : vector<6x288xf32>
    %cst_14 = arith.constant 0.000000e+00 : f32
    %15 = vector.broadcast %cst_14 : f32 to vector<6x288xf32>
    %16 = arith.maximumf %14, %15 : vector<6x288xf32>
    %c0_15 = arith.constant 0 : index
    %c0_16 = arith.constant 0 : index
    %17 = vector.load %arg7[%c0_15, %c0_16] : memref<6x288xf32, #tpu.memory_space<vmem>>, vector<6x288xf32>
    tpu.vector_store %arg7[%c0_15, %c0_16], %16 {strides = array<i32>} : memref<6x288xf32, #tpu.memory_space<vmem>>, vector<6x288xf32>,
    return
  }
  func.func @transform_0(%arg0: i32) -> (i32, i32) {
    %c0_i32 = arith.constant 0 : i32
    %c0_i32_0 = arith.constant 0 : i32
    %c0_i32_1 = arith.constant 0 : i32
    return %c0_i32, %c0_i32_0 : i32, i32
  }
  func.func @transform_1(%arg0: i32) -> (i32, i32) {
    %c0_i32 = arith.constant 0 : i32
    %c0_i32_0 = arith.constant 0 : i32
    %c0_i32_1 = arith.constant 0 : i32
    return %c0_i32, %c0_i32_0 : i32, i32
  }
  func.func @transform_2(%arg0: i32) -> (i32, i32) {
    %c0_i32 = arith.constant 0 : i32
    %c0_i32_0 = arith.constant 0 : i32
    %c0_i32_1 = arith.constant 0 : i32
    return %c0_i32, %c0_i32_0 : i32, i32
  }
  func.func @transform_3(%arg0: i32) -> (i32, i32) {
    %c0_i32 = arith.constant 0 : i32
    %c0_i32_0 = arith.constant 0 : i32
    %c0_i32_1 = arith.constant 0 : i32
    return %c0_i32, %c0_i32_0 : i32, i32
  }
  func.func @transform_4(%arg0: i32) -> (i32, i32) {
    %c0_i32 = arith.constant 0 : i32
    %c0_i32_0 = arith.constant 0 : i32
    %c0_i32_1 = arith.constant 0 : i32
    return %c0_i32, %c0_i32_0 : i32, i32
  }
  func.func @transform_5(%arg0: i32) -> (i32, i32) {
    %c0_i32 = arith.constant 0 : i32
    %c0_i32_0 = arith.constant 0 : i32
    %c0_i32_1 = arith.constant 0 : i32
    return %c0_i32, %c0_i32_0 : i32, i32
  }
  func.func @transform_6(%arg0: i32) -> (i32, i32) {
    %c0_i32 = arith.constant 0 : i32
    %c0_i32_0 = arith.constant 0 : i32
    %c0_i32_1 = arith.constant 0 : i32
    return %c0_i32, %c0_i32_0 : i32, i32
  }
}

module attributes {stable_mosaic.version = 11 : i64} {
  func.func @_conv2_fc_kernel(%arg0: i32, %arg1: memref<32x150xf32, #tpu.memory_space<vmem>>, %arg2: memref<32x150xf32, #tpu.memory_space<vmem>>, %arg3: memref<32x150xf32, #tpu.memory_space<vmem>>, %arg4: memref<32x150xf32, #tpu.memory_space<vmem>>, %arg5: memref<150x16xf32, #tpu.memory_space<vmem>>, %arg6: memref<1x16xf32, #tpu.memory_space<vmem>>, %arg7: memref<16x16x120xf32, #tpu.memory_space<vmem>>, %arg8: memref<1x120xf32, #tpu.memory_space<vmem>>, %arg9: memref<120x84xf32, #tpu.memory_space<vmem>>, %arg10: memref<1x84xf32, #tpu.memory_space<vmem>>, %arg11: memref<84x10xf32, #tpu.memory_space<vmem>>, %arg12: memref<1x10xf32, #tpu.memory_space<vmem>>, %arg13: memref<2x10xf32, #tpu.memory_space<vmem>>) attributes {dimension_semantics = [#tpu.dimension_semantics<arbitrary>], iteration_bounds = array<i64: 1>, scalar_prefetch = 0 : i64, scratch_operands = 0 : i64, tpu.core_type = #tpu.core_type<tc>, window_params = [{pipeline_mode = #tpu.pipeline_mode<synchronous>, transform_indices = @transform_0, window_bounds = array<i64: 32, 150>}, {pipeline_mode = #tpu.pipeline_mode<synchronous>, transform_indices = @transform_1, window_bounds = array<i64: 32, 150>}, {pipeline_mode = #tpu.pipeline_mode<synchronous>, transform_indices = @transform_2, window_bounds = array<i64: 32, 150>}, {pipeline_mode = #tpu.pipeline_mode<synchronous>, transform_indices = @transform_3, window_bounds = array<i64: 32, 150>}, {pipeline_mode = #tpu.pipeline_mode<synchronous>, transform_indices = @transform_4, window_bounds = array<i64: 150, 16>}, {pipeline_mode = #tpu.pipeline_mode<synchronous>, transform_indices = @transform_5, window_bounds = array<i64: 1, 16>}, {pipeline_mode = #tpu.pipeline_mode<synchronous>, transform_indices = @transform_6, window_bounds = array<i64: 16, 16, 120>}, {pipeline_mode = #tpu.pipeline_mode<synchronous>, transform_indices = @transform_7, window_bounds = array<i64: 1, 120>}, {pipeline_mode = #tpu.pipeline_mode<synchronous>, transform_indices = @transform_8, window_bounds = array<i64: 120, 84>}, {pipeline_mode = #tpu.pipeline_mode<synchronous>, transform_indices = @transform_9, window_bounds = array<i64: 1, 84>}, {pipeline_mode = #tpu.pipeline_mode<synchronous>, transform_indices = @transform_10, window_bounds = array<i64: 84, 10>}, {pipeline_mode = #tpu.pipeline_mode<synchronous>, transform_indices = @transform_11, window_bounds = array<i64: 1, 10>}, {pipeline_mode = #tpu.pipeline_mode<synchronous>, transform_indices = @transform_12, window_bounds = array<i64: 2, 10>}]} {
    %c0 = arith.constant 0 : index
    %c0_0 = arith.constant 0 : index
    %0 = vector.load %arg5[%c0, %c0_0] : memref<150x16xf32, #tpu.memory_space<vmem>>, vector<150x16xf32>
    %c0_1 = arith.constant 0 : index
    %c0_2 = arith.constant 0 : index
    %1 = vector.load %arg1[%c0_1, %c0_2] : memref<32x150xf32, #tpu.memory_space<vmem>>, vector<32x150xf32>
    %cst = arith.constant dense<0.000000e+00> : vector<32x16xf32>
    %2 = tpu.matmul %1, %0, %cst {dimension_numbers = #tpu.dot_dimension_numbers<[1], [0], [0], [1], [0, 0, 1, 1], [], []>} : vector<32x150xf32>, vector<150x16xf32>, vector<32x16xf32> -> vector<32x16xf32>
    %c0_3 = arith.constant 0 : index
    %c0_4 = arith.constant 0 : index
    %3 = vector.load %arg2[%c0_3, %c0_4] : memref<32x150xf32, #tpu.memory_space<vmem>>, vector<32x150xf32>
    %cst_5 = arith.constant dense<0.000000e+00> : vector<32x16xf32>
    %4 = tpu.matmul %3, %0, %cst_5 {dimension_numbers = #tpu.dot_dimension_numbers<[1], [0], [0], [1], [0, 0, 1, 1], [], []>} : vector<32x150xf32>, vector<150x16xf32>, vector<32x16xf32> -> vector<32x16xf32>
    %5 = arith.maximumf %2, %4 : vector<32x16xf32>
    %c0_6 = arith.constant 0 : index
    %c0_7 = arith.constant 0 : index
    %6 = vector.load %arg3[%c0_6, %c0_7] : memref<32x150xf32, #tpu.memory_space<vmem>>, vector<32x150xf32>
    %cst_8 = arith.constant dense<0.000000e+00> : vector<32x16xf32>
    %7 = tpu.matmul %6, %0, %cst_8 {dimension_numbers = #tpu.dot_dimension_numbers<[1], [0], [0], [1], [0, 0, 1, 1], [], []>} : vector<32x150xf32>, vector<150x16xf32>, vector<32x16xf32> -> vector<32x16xf32>
    %c0_9 = arith.constant 0 : index
    %c0_10 = arith.constant 0 : index
    %8 = vector.load %arg4[%c0_9, %c0_10] : memref<32x150xf32, #tpu.memory_space<vmem>>, vector<32x150xf32>
    %cst_11 = arith.constant dense<0.000000e+00> : vector<32x16xf32>
    %9 = tpu.matmul %8, %0, %cst_11 {dimension_numbers = #tpu.dot_dimension_numbers<[1], [0], [0], [1], [0, 0, 1, 1], [], []>} : vector<32x150xf32>, vector<150x16xf32>, vector<32x16xf32> -> vector<32x16xf32>
    %10 = arith.maximumf %7, %9 : vector<32x16xf32>
    %11 = arith.maximumf %5, %10 : vector<32x16xf32>
    %c0_12 = arith.constant 0 : index
    %c0_13 = arith.constant 0 : index
    %12 = vector.load %arg6[%c0_12, %c0_13] : memref<1x16xf32, #tpu.memory_space<vmem>>, vector<1x16xf32>
    %13 = vector.broadcast %12 : vector<1x16xf32> to vector<32x16xf32>
    %14 = arith.addf %11, %13 : vector<32x16xf32>
    %cst_14 = arith.constant 0.000000e+00 : f32
    %15 = vector.broadcast %cst_14 : f32 to vector<32x16xf32>
    %16 = arith.maximumf %14, %15 : vector<32x16xf32>
    %cst_15 = arith.constant 0.000000e+00 : f32
    %17 = vector.broadcast %cst_15 : f32 to vector<2x120xf32>
    %18 = vector.extract_strided_slice %16 {offsets = [0, 0], sizes = [2, 16], strides = [1, 1]} : vector<32x16xf32> to vector<2x16xf32>
    %c0_16 = arith.constant 0 : index
    %c0_17 = arith.constant 0 : index
    %c0_18 = arith.constant 0 : index
    %19 = vector.load %arg7[%c0_16, %c0_17, %c0_18] : memref<16x16x120xf32, #tpu.memory_space<vmem>>, vector<1x16x120xf32>
    %20 = vector.shape_cast %19 : vector<1x16x120xf32> to vector<16x120xf32>
    %cst_19 = arith.constant dense<0.000000e+00> : vector<2x120xf32>
    %21 = tpu.matmul %18, %20, %cst_19 {dimension_numbers = #tpu.dot_dimension_numbers<[1], [0], [0], [1], [0, 0, 1, 1], [], []>} : vector<2x16xf32>, vector<16x120xf32>, vector<2x120xf32> -> vector<2x120xf32>
    %22 = arith.addf %17, %21 : vector<2x120xf32>
    %23 = vector.extract_strided_slice %16 {offsets = [2, 0], sizes = [2, 16], strides = [1, 1]} : vector<32x16xf32> to vector<2x16xf32>
    %c1 = arith.constant 1 : index
    %c0_20 = arith.constant 0 : index
    %c0_21 = arith.constant 0 : index
    %24 = vector.load %arg7[%c1, %c0_20, %c0_21] : memref<16x16x120xf32, #tpu.memory_space<vmem>>, vector<1x16x120xf32>
    %25 = vector.shape_cast %24 : vector<1x16x120xf32> to vector<16x120xf32>
    %cst_22 = arith.constant dense<0.000000e+00> : vector<2x120xf32>
    %26 = tpu.matmul %23, %25, %cst_22 {dimension_numbers = #tpu.dot_dimension_numbers<[1], [0], [0], [1], [0, 0, 1, 1], [], []>} : vector<2x16xf32>, vector<16x120xf32>, vector<2x120xf32> -> vector<2x120xf32>
    %27 = arith.addf %22, %26 : vector<2x120xf32>
    %28 = vector.extract_strided_slice %16 {offsets = [4, 0], sizes = [2, 16], strides = [1, 1]} : vector<32x16xf32> to vector<2x16xf32>
    %c2 = arith.constant 2 : index
    %c0_23 = arith.constant 0 : index
    %c0_24 = arith.constant 0 : index
    %29 = vector.load %arg7[%c2, %c0_23, %c0_24] : memref<16x16x120xf32, #tpu.memory_space<vmem>>, vector<1x16x120xf32>
    %30 = vector.shape_cast %29 : vector<1x16x120xf32> to vector<16x120xf32>
    %cst_25 = arith.constant dense<0.000000e+00> : vector<2x120xf32>
    %31 = tpu.matmul %28, %30, %cst_25 {dimension_numbers = #tpu.dot_dimension_numbers<[1], [0], [0], [1], [0, 0, 1, 1], [], []>} : vector<2x16xf32>, vector<16x120xf32>, vector<2x120xf32> -> vector<2x120xf32>
    %32 = arith.addf %27, %31 : vector<2x120xf32>
    %33 = vector.extract_strided_slice %16 {offsets = [6, 0], sizes = [2, 16], strides = [1, 1]} : vector<32x16xf32> to vector<2x16xf32>
    %c3 = arith.constant 3 : index
    %c0_26 = arith.constant 0 : index
    %c0_27 = arith.constant 0 : index
    %34 = vector.load %arg7[%c3, %c0_26, %c0_27] : memref<16x16x120xf32, #tpu.memory_space<vmem>>, vector<1x16x120xf32>
    %35 = vector.shape_cast %34 : vector<1x16x120xf32> to vector<16x120xf32>
    %cst_28 = arith.constant dense<0.000000e+00> : vector<2x120xf32>
    %36 = tpu.matmul %33, %35, %cst_28 {dimension_numbers = #tpu.dot_dimension_numbers<[1], [0], [0], [1], [0, 0, 1, 1], [], []>} : vector<2x16xf32>, vector<16x120xf32>, vector<2x120xf32> -> vector<2x120xf32>
    %37 = arith.addf %32, %36 : vector<2x120xf32>
    %38 = vector.extract_strided_slice %16 {offsets = [8, 0], sizes = [2, 16], strides = [1, 1]} : vector<32x16xf32> to vector<2x16xf32>
    %c4 = arith.constant 4 : index
    %c0_29 = arith.constant 0 : index
    %c0_30 = arith.constant 0 : index
    %39 = vector.load %arg7[%c4, %c0_29, %c0_30] : memref<16x16x120xf32, #tpu.memory_space<vmem>>, vector<1x16x120xf32>
    %40 = vector.shape_cast %39 : vector<1x16x120xf32> to vector<16x120xf32>
    %cst_31 = arith.constant dense<0.000000e+00> : vector<2x120xf32>
    %41 = tpu.matmul %38, %40, %cst_31 {dimension_numbers = #tpu.dot_dimension_numbers<[1], [0], [0], [1], [0, 0, 1, 1], [], []>} : vector<2x16xf32>, vector<16x120xf32>, vector<2x120xf32> -> vector<2x120xf32>
    %42 = arith.addf %37, %41 : vector<2x120xf32>
    %43 = vector.extract_strided_slice %16 {offsets = [10, 0], sizes = [2, 16], strides = [1, 1]} : vector<32x16xf32> to vector<2x16xf32>
    %c5 = arith.constant 5 : index
    %c0_32 = arith.constant 0 : index
    %c0_33 = arith.constant 0 : index
    %44 = vector.load %arg7[%c5, %c0_32, %c0_33] : memref<16x16x120xf32, #tpu.memory_space<vmem>>, vector<1x16x120xf32>
    %45 = vector.shape_cast %44 : vector<1x16x120xf32> to vector<16x120xf32>
    %cst_34 = arith.constant dense<0.000000e+00> : vector<2x120xf32>
    %46 = tpu.matmul %43, %45, %cst_34 {dimension_numbers = #tpu.dot_dimension_numbers<[1], [0], [0], [1], [0, 0, 1, 1], [], []>} : vector<2x16xf32>, vector<16x120xf32>, vector<2x120xf32> -> vector<2x120xf32>
    %47 = arith.addf %42, %46 : vector<2x120xf32>
    %48 = vector.extract_strided_slice %16 {offsets = [12, 0], sizes = [2, 16], strides = [1, 1]} : vector<32x16xf32> to vector<2x16xf32>
    %c6 = arith.constant 6 : index
    %c0_35 = arith.constant 0 : index
    %c0_36 = arith.constant 0 : index
    %49 = vector.load %arg7[%c6, %c0_35, %c0_36] : memref<16x16x120xf32, #tpu.memory_space<vmem>>, vector<1x16x120xf32>
    %50 = vector.shape_cast %49 : vector<1x16x120xf32> to vector<16x120xf32>
    %cst_37 = arith.constant dense<0.000000e+00> : vector<2x120xf32>
    %51 = tpu.matmul %48, %50, %cst_37 {dimension_numbers = #tpu.dot_dimension_numbers<[1], [0], [0], [1], [0, 0, 1, 1], [], []>} : vector<2x16xf32>, vector<16x120xf32>, vector<2x120xf32> -> vector<2x120xf32>
    %52 = arith.addf %47, %51 : vector<2x120xf32>
    %53 = vector.extract_strided_slice %16 {offsets = [14, 0], sizes = [2, 16], strides = [1, 1]} : vector<32x16xf32> to vector<2x16xf32>
    %c7 = arith.constant 7 : index
    %c0_38 = arith.constant 0 : index
    %c0_39 = arith.constant 0 : index
    %54 = vector.load %arg7[%c7, %c0_38, %c0_39] : memref<16x16x120xf32, #tpu.memory_space<vmem>>, vector<1x16x120xf32>
    %55 = vector.shape_cast %54 : vector<1x16x120xf32> to vector<16x120xf32>
    %cst_40 = arith.constant dense<0.000000e+00> : vector<2x120xf32>
    %56 = tpu.matmul %53, %55, %cst_40 {dimension_numbers = #tpu.dot_dimension_numbers<[1], [0], [0], [1], [0, 0, 1, 1], [], []>} : vector<2x16xf32>, vector<16x120xf32>, vector<2x120xf32> -> vector<2x120xf32>
    %57 = arith.addf %52, %56 : vector<2x120xf32>
    %58 = vector.extract_strided_slice %16 {offsets = [16, 0], sizes = [2, 16], strides = [1, 1]} : vector<32x16xf32> to vector<2x16xf32>
    %c8 = arith.constant 8 : index
    %c0_41 = arith.constant 0 : index
    %c0_42 = arith.constant 0 : index
    %59 = vector.load %arg7[%c8, %c0_41, %c0_42] : memref<16x16x120xf32, #tpu.memory_space<vmem>>, vector<1x16x120xf32>
    %60 = vector.shape_cast %59 : vector<1x16x120xf32> to vector<16x120xf32>
    %cst_43 = arith.constant dense<0.000000e+00> : vector<2x120xf32>
    %61 = tpu.matmul %58, %60, %cst_43 {dimension_numbers = #tpu.dot_dimension_numbers<[1], [0], [0], [1], [0, 0, 1, 1], [], []>} : vector<2x16xf32>, vector<16x120xf32>, vector<2x120xf32> -> vector<2x120xf32>
    %62 = arith.addf %57, %61 : vector<2x120xf32>
    %63 = vector.extract_strided_slice %16 {offsets = [18, 0], sizes = [2, 16], strides = [1, 1]} : vector<32x16xf32> to vector<2x16xf32>
    %c9 = arith.constant 9 : index
    %c0_44 = arith.constant 0 : index
    %c0_45 = arith.constant 0 : index
    %64 = vector.load %arg7[%c9, %c0_44, %c0_45] : memref<16x16x120xf32, #tpu.memory_space<vmem>>, vector<1x16x120xf32>
    %65 = vector.shape_cast %64 : vector<1x16x120xf32> to vector<16x120xf32>
    %cst_46 = arith.constant dense<0.000000e+00> : vector<2x120xf32>
    %66 = tpu.matmul %63, %65, %cst_46 {dimension_numbers = #tpu.dot_dimension_numbers<[1], [0], [0], [1], [0, 0, 1, 1], [], []>} : vector<2x16xf32>, vector<16x120xf32>, vector<2x120xf32> -> vector<2x120xf32>
    %67 = arith.addf %62, %66 : vector<2x120xf32>
    %68 = vector.extract_strided_slice %16 {offsets = [20, 0], sizes = [2, 16], strides = [1, 1]} : vector<32x16xf32> to vector<2x16xf32>
    %c10 = arith.constant 10 : index
    %c0_47 = arith.constant 0 : index
    %c0_48 = arith.constant 0 : index
    %69 = vector.load %arg7[%c10, %c0_47, %c0_48] : memref<16x16x120xf32, #tpu.memory_space<vmem>>, vector<1x16x120xf32>
    %70 = vector.shape_cast %69 : vector<1x16x120xf32> to vector<16x120xf32>
    %cst_49 = arith.constant dense<0.000000e+00> : vector<2x120xf32>
    %71 = tpu.matmul %68, %70, %cst_49 {dimension_numbers = #tpu.dot_dimension_numbers<[1], [0], [0], [1], [0, 0, 1, 1], [], []>} : vector<2x16xf32>, vector<16x120xf32>, vector<2x120xf32> -> vector<2x120xf32>
    %72 = arith.addf %67, %71 : vector<2x120xf32>
    %73 = vector.extract_strided_slice %16 {offsets = [22, 0], sizes = [2, 16], strides = [1, 1]} : vector<32x16xf32> to vector<2x16xf32>
    %c11 = arith.constant 11 : index
    %c0_50 = arith.constant 0 : index
    %c0_51 = arith.constant 0 : index
    %74 = vector.load %arg7[%c11, %c0_50, %c0_51] : memref<16x16x120xf32, #tpu.memory_space<vmem>>, vector<1x16x120xf32>
    %75 = vector.shape_cast %74 : vector<1x16x120xf32> to vector<16x120xf32>
    %cst_52 = arith.constant dense<0.000000e+00> : vector<2x120xf32>
    %76 = tpu.matmul %73, %75, %cst_52 {dimension_numbers = #tpu.dot_dimension_numbers<[1], [0], [0], [1], [0, 0, 1, 1], [], []>} : vector<2x16xf32>, vector<16x120xf32>, vector<2x120xf32> -> vector<2x120xf32>
    %77 = arith.addf %72, %76 : vector<2x120xf32>
    %78 = vector.extract_strided_slice %16 {offsets = [24, 0], sizes = [2, 16], strides = [1, 1]} : vector<32x16xf32> to vector<2x16xf32>
    %c12 = arith.constant 12 : index
    %c0_53 = arith.constant 0 : index
    %c0_54 = arith.constant 0 : index
    %79 = vector.load %arg7[%c12, %c0_53, %c0_54] : memref<16x16x120xf32, #tpu.memory_space<vmem>>, vector<1x16x120xf32>
    %80 = vector.shape_cast %79 : vector<1x16x120xf32> to vector<16x120xf32>
    %cst_55 = arith.constant dense<0.000000e+00> : vector<2x120xf32>
    %81 = tpu.matmul %78, %80, %cst_55 {dimension_numbers = #tpu.dot_dimension_numbers<[1], [0], [0], [1], [0, 0, 1, 1], [], []>} : vector<2x16xf32>, vector<16x120xf32>, vector<2x120xf32> -> vector<2x120xf32>
    %82 = arith.addf %77, %81 : vector<2x120xf32>
    %83 = vector.extract_strided_slice %16 {offsets = [26, 0], sizes = [2, 16], strides = [1, 1]} : vector<32x16xf32> to vector<2x16xf32>
    %c13 = arith.constant 13 : index
    %c0_56 = arith.constant 0 : index
    %c0_57 = arith.constant 0 : index
    %84 = vector.load %arg7[%c13, %c0_56, %c0_57] : memref<16x16x120xf32, #tpu.memory_space<vmem>>, vector<1x16x120xf32>
    %85 = vector.shape_cast %84 : vector<1x16x120xf32> to vector<16x120xf32>
    %cst_58 = arith.constant dense<0.000000e+00> : vector<2x120xf32>
    %86 = tpu.matmul %83, %85, %cst_58 {dimension_numbers = #tpu.dot_dimension_numbers<[1], [0], [0], [1], [0, 0, 1, 1], [], []>} : vector<2x16xf32>, vector<16x120xf32>, vector<2x120xf32> -> vector<2x120xf32>
    %87 = arith.addf %82, %86 : vector<2x120xf32>
    %88 = vector.extract_strided_slice %16 {offsets = [28, 0], sizes = [2, 16], strides = [1, 1]} : vector<32x16xf32> to vector<2x16xf32>
    %c14 = arith.constant 14 : index
    %c0_59 = arith.constant 0 : index
    %c0_60 = arith.constant 0 : index
    %89 = vector.load %arg7[%c14, %c0_59, %c0_60] : memref<16x16x120xf32, #tpu.memory_space<vmem>>, vector<1x16x120xf32>
    %90 = vector.shape_cast %89 : vector<1x16x120xf32> to vector<16x120xf32>
    %cst_61 = arith.constant dense<0.000000e+00> : vector<2x120xf32>
    %91 = tpu.matmul %88, %90, %cst_61 {dimension_numbers = #tpu.dot_dimension_numbers<[1], [0], [0], [1], [0, 0, 1, 1], [], []>} : vector<2x16xf32>, vector<16x120xf32>, vector<2x120xf32> -> vector<2x120xf32>
    %92 = arith.addf %87, %91 : vector<2x120xf32>
    %93 = vector.extract_strided_slice %16 {offsets = [30, 0], sizes = [2, 16], strides = [1, 1]} : vector<32x16xf32> to vector<2x16xf32>
    %c15 = arith.constant 15 : index
    %c0_62 = arith.constant 0 : index
    %c0_63 = arith.constant 0 : index
    %94 = vector.load %arg7[%c15, %c0_62, %c0_63] : memref<16x16x120xf32, #tpu.memory_space<vmem>>, vector<1x16x120xf32>
    %95 = vector.shape_cast %94 : vector<1x16x120xf32> to vector<16x120xf32>
    %cst_64 = arith.constant dense<0.000000e+00> : vector<2x120xf32>
    %96 = tpu.matmul %93, %95, %cst_64 {dimension_numbers = #tpu.dot_dimension_numbers<[1], [0], [0], [1], [0, 0, 1, 1], [], []>} : vector<2x16xf32>, vector<16x120xf32>, vector<2x120xf32> -> vector<2x120xf32>
    %97 = arith.addf %92, %96 : vector<2x120xf32>
    %c0_65 = arith.constant 0 : index
    %c0_66 = arith.constant 0 : index
    %98 = vector.load %arg8[%c0_65, %c0_66] : memref<1x120xf32, #tpu.memory_space<vmem>>, vector<1x120xf32>
    %99 = vector.broadcast %98 : vector<1x120xf32> to vector<2x120xf32>
    %100 = arith.addf %97, %99 : vector<2x120xf32>
    %cst_67 = arith.constant 0.000000e+00 : f32
    %101 = vector.broadcast %cst_67 : f32 to vector<2x120xf32>
    %102 = arith.maximumf %100, %101 : vector<2x120xf32>
    %c0_68 = arith.constant 0 : index
    %c0_69 = arith.constant 0 : index
    %103 = vector.load %arg9[%c0_68, %c0_69] : memref<120x84xf32, #tpu.memory_space<vmem>>, vector<120x84xf32>
    %cst_70 = arith.constant dense<0.000000e+00> : vector<2x84xf32>
    %104 = tpu.matmul %102, %103, %cst_70 {dimension_numbers = #tpu.dot_dimension_numbers<[1], [0], [0], [1], [0, 0, 1, 1], [], []>} : vector<2x120xf32>, vector<120x84xf32>, vector<2x84xf32> -> vector<2x84xf32>
    %c0_71 = arith.constant 0 : index
    %c0_72 = arith.constant 0 : index
    %105 = vector.load %arg10[%c0_71, %c0_72] : memref<1x84xf32, #tpu.memory_space<vmem>>, vector<1x84xf32>
    %106 = vector.broadcast %105 : vector<1x84xf32> to vector<2x84xf32>
    %107 = arith.addf %104, %106 : vector<2x84xf32>
    %cst_73 = arith.constant 0.000000e+00 : f32
    %108 = vector.broadcast %cst_73 : f32 to vector<2x84xf32>
    %109 = arith.maximumf %107, %108 : vector<2x84xf32>
    %c0_74 = arith.constant 0 : index
    %c0_75 = arith.constant 0 : index
    %110 = vector.load %arg11[%c0_74, %c0_75] : memref<84x10xf32, #tpu.memory_space<vmem>>, vector<84x10xf32>
    %cst_76 = arith.constant dense<0.000000e+00> : vector<2x10xf32>
    %111 = tpu.matmul %109, %110, %cst_76 {dimension_numbers = #tpu.dot_dimension_numbers<[1], [0], [0], [1], [0, 0, 1, 1], [], []>} : vector<2x84xf32>, vector<84x10xf32>, vector<2x10xf32> -> vector<2x10xf32>
    %c0_77 = arith.constant 0 : index
    %c0_78 = arith.constant 0 : index
    %112 = vector.load %arg12[%c0_77, %c0_78] : memref<1x10xf32, #tpu.memory_space<vmem>>, vector<1x10xf32>
    %113 = vector.broadcast %112 : vector<1x10xf32> to vector<2x10xf32>
    %114 = arith.addf %111, %113 : vector<2x10xf32>
    %c0_79 = arith.constant 0 : index
    %c0_80 = arith.constant 0 : index
    %115 = vector.load %arg13[%c0_79, %c0_80] : memref<2x10xf32, #tpu.memory_space<vmem>>, vector<2x10xf32>
    tpu.vector_store %arg13[%c0_79, %c0_80], %114 {strides = array<i32>} : memref<2x10xf32, #tpu.memory_space<vmem>>, vector<2x10xf32>,
    return
  }
  func.func @transform_0(%arg0: i32) -> (i32, i32) {
    %c0_i32 = arith.constant 0 : i32
    %c0_i32_0 = arith.constant 0 : i32
    %c0_i32_1 = arith.constant 0 : i32
    return %c0_i32, %c0_i32_0 : i32, i32
  }
  func.func @transform_1(%arg0: i32) -> (i32, i32) {
    %c0_i32 = arith.constant 0 : i32
    %c0_i32_0 = arith.constant 0 : i32
    %c0_i32_1 = arith.constant 0 : i32
    return %c0_i32, %c0_i32_0 : i32, i32
  }
  func.func @transform_2(%arg0: i32) -> (i32, i32) {
    %c0_i32 = arith.constant 0 : i32
    %c0_i32_0 = arith.constant 0 : i32
    %c0_i32_1 = arith.constant 0 : i32
    return %c0_i32, %c0_i32_0 : i32, i32
  }
  func.func @transform_3(%arg0: i32) -> (i32, i32) {
    %c0_i32 = arith.constant 0 : i32
    %c0_i32_0 = arith.constant 0 : i32
    %c0_i32_1 = arith.constant 0 : i32
    return %c0_i32, %c0_i32_0 : i32, i32
  }
  func.func @transform_4(%arg0: i32) -> (i32, i32) {
    %c0_i32 = arith.constant 0 : i32
    %c0_i32_0 = arith.constant 0 : i32
    %c0_i32_1 = arith.constant 0 : i32
    return %c0_i32, %c0_i32_0 : i32, i32
  }
  func.func @transform_5(%arg0: i32) -> (i32, i32) {
    %c0_i32 = arith.constant 0 : i32
    %c0_i32_0 = arith.constant 0 : i32
    %c0_i32_1 = arith.constant 0 : i32
    return %c0_i32, %c0_i32_0 : i32, i32
  }
  func.func @transform_6(%arg0: i32) -> (i32, i32, i32) {
    %c0_i32 = arith.constant 0 : i32
    %c0_i32_0 = arith.constant 0 : i32
    %c0_i32_1 = arith.constant 0 : i32
    %c0_i32_2 = arith.constant 0 : i32
    return %c0_i32, %c0_i32_0, %c0_i32_1 : i32, i32, i32
  }
  func.func @transform_7(%arg0: i32) -> (i32, i32) {
    %c0_i32 = arith.constant 0 : i32
    %c0_i32_0 = arith.constant 0 : i32
    %c0_i32_1 = arith.constant 0 : i32
    return %c0_i32, %c0_i32_0 : i32, i32
  }
  func.func @transform_8(%arg0: i32) -> (i32, i32) {
    %c0_i32 = arith.constant 0 : i32
    %c0_i32_0 = arith.constant 0 : i32
    %c0_i32_1 = arith.constant 0 : i32
    return %c0_i32, %c0_i32_0 : i32, i32
  }
  func.func @transform_9(%arg0: i32) -> (i32, i32) {
    %c0_i32 = arith.constant 0 : i32
    %c0_i32_0 = arith.constant 0 : i32
    %c0_i32_1 = arith.constant 0 : i32
    return %c0_i32, %c0_i32_0 : i32, i32
  }
  func.func @transform_10(%arg0: i32) -> (i32, i32) {
    %c0_i32 = arith.constant 0 : i32
    %c0_i32_0 = arith.constant 0 : i32
    %c0_i32_1 = arith.constant 0 : i32
    return %c0_i32, %c0_i32_0 : i32, i32
  }
  func.func @transform_11(%arg0: i32) -> (i32, i32) {
    %c0_i32 = arith.constant 0 : i32
    %c0_i32_0 = arith.constant 0 : i32
    %c0_i32_1 = arith.constant 0 : i32
    return %c0_i32, %c0_i32_0 : i32, i32
  }
  func.func @transform_12(%arg0: i32) -> (i32, i32) {
    %c0_i32 = arith.constant 0 : i32
    %c0_i32_0 = arith.constant 0 : i32
    %c0_i32_1 = arith.constant 0 : i32
    return %c0_i32, %c0_i32_0 : i32, i32
  }
}

</mosaic_0001>

<bundles_post_ra>
// kernel: lenet5_forward.2
= control target key start
LH: loop header
LB: loop body
LE: loop exit
PB: predicated region body
PF: predicated region fallthrough
CT: control target
= control target key end

     0   :  { %vm40_vm0 = vcmask 1040384   ;;  %v794_v0 = vmov 0.0   ;;  %vm36_vm1 = vcmask 203776   ;;  %vm795_vm2 = vmmov 0   ;;  %s1049_s0 = inlined_call_operand.vmem [shape: f32[25,288], index: 0, kind: input, shape index: {}]   ;;  %s1050_s4 = inlined_call_operand.vmem [shape: f32[6,25], index: 4, kind: input, shape index: {}]   ;;  %s1051_s1 = inlined_call_operand.vmem [shape: f32[25,288], index: 1, kind: input, shape index: {}]   ;;  %s1052_s2 = inlined_call_operand.vmem [shape: f32[25,288], index: 2, kind: input, shape index: {}]   ;;  %s1053_s3 = inlined_call_operand.vmem [shape: f32[25,288], index: 3, kind: input, shape index: {}]   ;;  %s1054_s5 = inlined_call_operand.vmem [shape: f32[6,1], index: 5, kind: input, shape index: {}]   ;;  %s1055_s6 = inlined_call_operand.vmem [shape: f32[6,288], index: 6, kind: output, shape index: {}]  }
   0x1   :  { %746 = vmatprep.subr.mxu1 %v794_v0  ;;  %v34_v1 = vld [vmem:[%s1049_s0 + $0x50] sm:$0x1]  ;;  %v35_v2 = vld [vmem:[%s1049_s0 + $0x58] sm:$0x1]  ;;  %v33_v3 = vld [vmem:[%s1049_s0 + $0x48] sm:$0x1]  ;;  %114 = vmatprep.mubr.f32.mxu0 %v794_v0 }
   0x2   :  { %706 = vmatprep.subr.msk.mxu0 %vm40_vm0, %v34_v1  ;;  %747 = vmatpush3.msk.msra.mxu1 %vm40_vm0, %v35_v2  ;;  %v31_v4 = vld [vmem:[%s1049_s0 + $0x38] sm:$0xff]  ;;  %v32_v5 = vld [vmem:[%s1049_s0 + $0x40] sm:$0xff]  ;;  %v30_v6 = vld [vmem:[%s1049_s0 + $0x30] sm:$0xff]  ;;  %v796_v51 = vmov 0   ;;  %vm700_vm3 = vcmask 259072  }
   0x3   :  { %707 = vmatpush1.msk.msra.mxu0 %vm40_vm0, %v33_v3  ;;  %748 = vmatprep.subr.mxu1 %v794_v0  ;;  %v28_v7 = vld [vmem:[%s1049_s0 + $0x20] sm:$0xff]  ;;  %v29_v8 = vld [vmem:[%s1049_s0 + $0x28] sm:$0xff]  ;;  %v27_v9 = vld [vmem:[%s1049_s0 + $0x18] sm:$0xff] }
   0x4   :  { %76 = vmatprep.subr.mxu0 %v31_v4  ;;  %749 = vmatpush3.msra.mxu1 %v32_v5  ;;  %v25_v10 = vld [vmem:[%s1049_s0 + $0x8] sm:$0xff]  ;;  %v26_v11 = vld [vmem:[%s1049_s0 + $0x10] sm:$0xff]  ;;  %v24_v12 = vld [vmem:[%s1049_s0] sm:$0xff] }
   0x5   :  { %77 = vmatpush1.msra.mxu0 %v30_v6  ;;  %750 = vmatprep.subr.mxu1 %v794_v0  ;;  %v879_v13 = vld [vmem:[%s1050_s4] sm:$0x3f]  ;;  %v201_v14 = vld [vmem:[%s1051_s1 + $0x50] sm:$0x1]  ;;  %v202_v15 = vld [vmem:[%s1051_s1 + $0x58] sm:$0x1] }
   0x6   :  { %78 = vmatprep.subr.mxu0 %v28_v7  ;;  %751 = vmatpush3.msra.mxu1 %v29_v8  ;;  %v200_v16 = vld [vmem:[%s1051_s1 + $0x48] sm:$0x1]  ;;  %v198_v17 = vld [vmem:[%s1051_s1 + $0x38] sm:$0xff]  ;;  %v199_v18 = vld [vmem:[%s1051_s1 + $0x40] sm:$0xff] }
   0x7   :  { %79 = vmatpush1.msra.mxu0 %v27_v9  ;;  %752 = vmatprep.subr.mxu1 %v794_v0  ;;  %v197_v19 = vld [vmem:[%s1051_s1 + $0x30] sm:$0xff]  ;;  %v195_v20 = vld [vmem:[%s1051_s1 + $0x20] sm:$0xff]  ;;  %v196_v21 = vld [vmem:[%s1051_s1 + $0x28] sm:$0xff] }
   0x8   :  { %80 = vmatprep.subr.mxu0 %v25_v10  ;;  %753 = vmatpush3.msra.mxu1 %v26_v11  ;;  %v194_v22 = vld [vmem:[%s1051_s1 + $0x18] sm:$0xff]  ;;  %v192_v23 = vld [vmem:[%s1051_s1 + $0x8] sm:$0xff]  ;;  %v193_v24 = vld [vmem:[%s1051_s1 + $0x10] sm:$0xff] }
   0x9   :  { %81 = vmatpush1.msra.mxu0 %v24_v12  ;;  %754 = vmatprep.mubr.msk.f32.mxu1 %vm795_vm2, %v794_v0  ;;  %v191_v25 = vld [vmem:[%s1051_s1] sm:$0xff]  ;;  %v366_v26 = vld [vmem:[%s1052_s2 + $0x50] sm:$0x1]  ;;  %v367_v27 = vld [vmem:[%s1052_s2 + $0x58] sm:$0x1] }
   0xa   :  { %757 = vmatprep.subr.mxu1 %v794_v0  ;;  %708 = vmatmul.mubr.msk.f32.vlgmr.msra.gmra.mxu0 %vm36_vm1, %v879_v13  ;;  %v365_v28 = vld [vmem:[%s1052_s2 + $0x48] sm:$0x1]  ;;  %v363_v29 = vld [vmem:[%s1052_s2 + $0x38] sm:$0xff]  ;;  %v364_v30 = vld [vmem:[%s1052_s2 + $0x40] sm:$0xff] }
   0xb   :  { %755 = vmatmul.mubr.msk.f32.vlgmr.msra.gmra.mxu1 %vm36_vm1, %v879_v13  ;;  %711 = vmatprep.subr.msk.mxu0 %vm40_vm0, %v201_v14  ;;  %v362_v31 = vld [vmem:[%s1052_s2 + $0x30] sm:$0xff]  ;;  %v360_v32 = vld [vmem:[%s1052_s2 + $0x20] sm:$0xff]  ;;  %v361_v33 = vld [vmem:[%s1052_s2 + $0x28] sm:$0xff] }
   0xc   :  { %758 = vmatpush3.msk.msra.mxu1 %vm40_vm0, %v202_v15  ;;  %712 = vmatpush1.msk.msra.mxu0 %vm40_vm0, %v200_v16  ;;  %v359_v34 = vld [vmem:[%s1052_s2 + $0x18] sm:$0xff]  ;;  %v357_v35 = vld [vmem:[%s1052_s2 + $0x8] sm:$0xff]  ;;  %v358_v36 = vld [vmem:[%s1052_s2 + $0x10] sm:$0xff] }
   0xd   :  { %759 = vmatprep.subr.mxu1 %v794_v0  ;;  %238 = vmatprep.subr.mxu0 %v198_v17  ;;  %v356_v37 = vld [vmem:[%s1052_s2] sm:$0xff]  ;;  %v528_v38 = vld [vmem:[%s1053_s3 + $0x50] sm:$0x1]  ;;  %v529_v39 = vld [vmem:[%s1053_s3 + $0x58] sm:$0x1] }
   0xe   :  { %760 = vmatpush3.msra.mxu1 %v199_v18  ;;  %239 = vmatpush1.msra.mxu0 %v197_v19  ;;  %v527_v40 = vld [vmem:[%s1053_s3 + $0x48] sm:$0x1]  ;;  %v525_v41 = vld [vmem:[%s1053_s3 + $0x38] sm:$0xff]  ;;  %v526_v42 = vld [vmem:[%s1053_s3 + $0x40] sm:$0xff] }
   0xf   :  { %761 = vmatprep.subr.mxu1 %v794_v0  ;;  %240 = vmatprep.subr.mxu0 %v195_v20  ;;  %v524_v43 = vld [vmem:[%s1053_s3 + $0x30] sm:$0xff]  ;;  %v522_v44 = vld [vmem:[%s1053_s3 + $0x20] sm:$0xff]  ;;  %v523_v45 = vld [vmem:[%s1053_s3 + $0x28] sm:$0xff] }
  0x10   :  { %762 = vmatpush3.msra.mxu1 %v196_v21  ;;  %241 = vmatpush1.msra.mxu0 %v194_v22  ;;  %v521_v46 = vld [vmem:[%s1053_s3 + $0x18] sm:$0xff]  ;;  %v519_v47 = vld [vmem:[%s1053_s3 + $0x8] sm:$0xff]  ;;  %v520_v48 = vld [vmem:[%s1053_s3 + $0x10] sm:$0xff] }
  0x11   :  { %763 = vmatprep.subr.mxu1 %v794_v0  ;;  %242 = vmatprep.subr.mxu0 %v192_v23  ;;  %v518_v49 = vld [vmem:[%s1053_s3] sm:$0xff] }
  0x12   :  { %764 = vmatpush3.msra.mxu1 %v193_v24  ;;  %765 = vmatprep.mubr.msk.f32.mxu1 %vm795_vm2, %v794_v0  ;;  %v686_v50 = vld [vmem:[%s1054_s5] sm:$0x3f] }
  0x13   :  { %243 = vmatpush1.msra.mxu0 %v191_v25  ;;  %276 = vmatprep.mubr.f32.mxu0 %v794_v0 }
  0x14   :  { %766 = vmatmul.mubr.msk.f32.vlgmr.msra.gmra.mxu1 %vm36_vm1, %v879_v13  ;;  %768 = vmatprep.subr.mxu1 %v794_v0 }
  0x15   :  { %713 = vmatmul.mubr.msk.f32.vlgmr.msra.gmra.mxu0 %vm36_vm1, %v879_v13  ;;  %716 = vmatprep.subr.msk.mxu0 %vm40_vm0, %v366_v26 }
  0x16   :  { %769 = vmatpush3.msk.msra.mxu1 %vm40_vm0, %v367_v27  ;;  %717 = vmatpush1.msk.msra.mxu0 %vm40_vm0, %v365_v28 }
  0x17   :  { %770 = vmatprep.subr.mxu1 %v794_v0  ;;  %403 = vmatprep.subr.mxu0 %v363_v29 }
  0x18   :  { %771 = vmatpush3.msra.mxu1 %v364_v30  ;;  %404 = vmatpush1.msra.mxu0 %v362_v31 }
  0x19   :  { %772 = vmatprep.subr.mxu1 %v794_v0  ;;  %405 = vmatprep.subr.mxu0 %v360_v32 }
  0x1a   :  { %773 = vmatpush3.msra.mxu1 %v361_v33  ;;  %406 = vmatpush1.msra.mxu0 %v359_v34 }
  0x1b   :  { %774 = vmatprep.subr.mxu1 %v794_v0  ;;  %407 = vmatprep.subr.mxu0 %v357_v35 }
  0x1c   :  { %775 = vmatpush3.msra.mxu1 %v358_v36  ;;  %408 = vmatpush1.msra.mxu0 %v356_v37 }
  0x1d   :  { %441 = vmatprep.mubr.f32.mxu0 %v794_v0  ;;  %776 = vmatprep.mubr.msk.f32.mxu1 %vm795_vm2, %v794_v0 }
  0x1e   :  { %779 = vmatprep.subr.mxu1 %v794_v0  ;;  %718 = vmatmul.mubr.msk.f32.vlgmr.msra.gmra.mxu0 %vm36_vm1, %v879_v13 }
  0x1f   :  { %777 = vmatmul.mubr.msk.f32.vlgmr.msra.gmra.mxu1 %vm36_vm1, %v879_v13  ;;  %721 = vmatprep.subr.msk.mxu0 %vm40_vm0, %v528_v38 }
  0x20   :  { %780 = vmatpush3.msk.msra.mxu1 %vm40_vm0, %v529_v39  ;;  %722 = vmatpush1.msk.msra.mxu0 %vm40_vm0, %v527_v40 }
  0x21   :  { %781 = vmatprep.subr.mxu1 %v794_v0  ;;  %565 = vmatprep.subr.mxu0 %v525_v41 }
  0x22   :  { %782 = vmatpush3.msra.mxu1 %v526_v42  ;;  %566 = vmatpush1.msra.mxu0 %v524_v43 }
  0x23   :  { %783 = vmatprep.subr.mxu1 %v794_v0  ;;  %567 = vmatprep.subr.mxu0 %v522_v44 }
  0x24   :  { %784 = vmatpush3.msra.mxu1 %v523_v45  ;;  %568 = vmatpush1.msra.mxu0 %v521_v46 }
  0x25   :  { %785 = vmatprep.subr.mxu1 %v794_v0  ;;  %569 = vmatprep.subr.mxu0 %v519_v47 }
  0x26   :  { %786 = vmatpush3.msra.mxu1 %v520_v48  ;;  %787 = vmatprep.mubr.msk.f32.mxu1 %vm795_vm2, %v794_v0 }
  0x27   :  { %570 = vmatpush1.msra.mxu0 %v518_v49  ;;  %603 = vmatprep.mubr.f32.mxu0 %v794_v0 }
  0x28   :  { %788 = vmatmul.mubr.msk.f32.vlgmr.msra.gmra.mxu1 %vm36_vm1, %v879_v13  ;;  %723 = vmatmul.mubr.msk.f32.vlgmr.msra.gmra.mxu0 %vm36_vm1, %v879_v13 }
  0x29   :  { %793 = vset.pattern.permute.xlu0 %v796_v51 }
  0x2a   :  { %689 = vperm.xlu0 %793, %v686_v50  }
  0xa5   :  { %v690_v6 = vpop.permute.xlu0 %689 }
  0xca   :  { %v116_v55 = vpop.f32.mrf.mxu0 }
  0xcb   :  { %v187_v52 = vpop.f32.mrf.mxu1 }
  0xcc   :  { %v118_v57 = vpop.f32.mrf.mxu0 }
  0xcd   :  { %v756_v53 = vpop.f32.mrf.mxu1 }
  0xd4   :  { %v349_v54 = vpop.f32.mrf.mxu1 }
  0xd5   :  { %v278_v58 = vpop.f32.mrf.mxu0  ;;  %v355_v2 = vmax.f32 %v187_v52, %v349_v54 }
  0xd6   :  { %v767_v56 = vpop.f32.mrf.mxu1  ;;  %v353_v3 = vmax.f32 %v116_v55, %v278_v58 }
  0xd7   :  { %v280_v60 = vpop.f32.mrf.mxu0 }
  0xd8   :  { %v354_v9 = vmax.f32 %v118_v57, %v280_v60 }
  0xde   :  { %v443_v62 = vpop.f32.mrf.mxu0 }
  0xdf   :  { %v514_v59 = vpop.f32.mrf.mxu1 }
  0xe0   :  { %v445_v63 = vpop.f32.mrf.mxu0 }
  0xe1   :  { %v778_v61 = vpop.f32.mrf.mxu1 }
  0xe8   :  { %v676_v0 = vpop.f32.mrf.mxu1  ;;  %v605_v1 = vpop.f32.mrf.mxu0 }
  0xe9   :  { %v682_v4 = vmax.f32 %v514_v59, %v676_v0  ;;  %v680_v5 = vmax.f32 %v443_v62, %v605_v1 }
  0xea   :  { %v607_v7 = vpop.f32.mrf.mxu0  ;;  %v789_v8 = vpop.f32.mrf.mxu1 }
  0xeb   :  { %v685_v10 = vmax.f32 %v355_v2, %v682_v4  ;;  %v683_v11 = vmax.f32 %v353_v3, %v680_v5  ;;  %v681_v12 = vmax.f32 %v445_v63, %v607_v7 }
  0xed   :  { %v684_v13 = vmax.f32 %v354_v9, %v681_v12  ;;  %v692_v14 = vadd.f32 %v690_v6, %v683_v11  ;;  %v694_v15 = vadd.f32 %v690_v6, %v685_v10 }
  0xef   :  { %v693_v16 = vadd.f32 %v690_v6, %v684_v13  ;;  %v695_v17 = vmax.f32 %v692_v14, 0.0  ;;  %v697_v18 = vmax.f32 %v694_v15, 0.0 }
  0xf1   :  { %v696_v19 = vmax.f32 %v693_v16, 0.0  ;;  %698 = vst [vmem:[%s1055_s6] sm:$0x3f] %v695_v17  ;;  %701 = vst.msk [vmem:[%s1055_s6 + $0x10] sm:$0x3f] %vm700_vm3, %v697_v18 }
  0xf3   :  { %699 = vst [vmem:[%s1055_s6 + $0x8] sm:$0x3f] %v696_v19 }

// kernel: lenet5_forward.3
= control target key start
LH: loop header
LB: loop body
LE: loop exit
PB: predicated region body
PF: predicated region fallthrough
CT: control target
= control target key end

     0   :  { %v2305_v1 = vmov 0.0   ;;  %s3071_s0 = inlined_call_operand.vmem [shape: f32[32,150], index: 0, kind: input, shape index: {}]   ;;  %s3072_s1 = inlined_call_operand.vmem [shape: f32[32,150], index: 1, kind: input, shape index: {}]   ;;  %s3073_s2 = inlined_call_operand.vmem [shape: f32[32,150], index: 2, kind: input, shape index: {}]   ;;  %s3074_s3 = inlined_call_operand.vmem [shape: f32[32,150], index: 3, kind: input, shape index: {}]   ;;  %s3075_s4 = inlined_call_operand.vmem [shape: f32[150,16], index: 4, kind: input, shape index: {}]   ;;  %s3076_s5 = inlined_call_operand.vmem [shape: f32[1,16], index: 5, kind: input, shape index: {}]   ;;  %s3077_s6 = inlined_call_operand.vmem [shape: f32[16,16,120], index: 6, kind: input, shape index: {}]   ;;  %s3078_s7 = inlined_call_operand.vmem [shape: f32[1,120], index: 7, kind: input, shape index: {}]   ;;  %s3079_s8 = inlined_call_operand.vmem [shape: f32[120,84], index: 8, kind: input, shape index: {}]   ;;  %s3080_s9 = inlined_call_operand.vmem [shape: f32[1,84], index: 9, kind: input, shape index: {}]   ;;  %s3081_s10 = inlined_call_operand.vmem [shape: f32[84,10], index: 10, kind: input, shape index: {}]   ;;  %s3082_s11 = inlined_call_operand.vmem [shape: f32[1,10], index: 11, kind: input, shape index: {}]   ;;  %s3083_s12 = inlined_call_operand.hbm [shape: f32[2,10], index: 12, kind: output, shape index: {}]  }
   0x1   :  { %v2376_v0 = vld [vmem:[%s3075_s4 + $0x78] sm:$0xff]  ;;  %86 = vmatprep.subr.mxu0 %v2305_v1  ;;  %191 = vmatprep.subr.mxu1 %v2305_v1  ;;  %v2383_v2 = vld [vmem:[%s3075_s4 + $0x70] sm:$0xff]  ;;  %v2392_v3 = vld [vmem:[%s3075_s4 + $0x68] sm:$0xff] }
   0x2   :  { %87 = vmatpush1.msra.mxu0 %v2376_v0  ;;  %192 = vmatpush1.msra.mxu1 %v2376_v0  ;;  %v2401_v4 = vld [vmem:[%s3075_s4 + $0x60] sm:$0xff]  ;;  %v2410_v5 = vld [vmem:[%s3075_s4 + $0x58] sm:$0xff]  ;;  %v2419_v6 = vld [vmem:[%s3075_s4 + $0x50] sm:$0xff] }
   0x3   :  { %88 = vmatprep.subr.mxu0 %v2305_v1  ;;  %193 = vmatprep.subr.mxu1 %v2305_v1  ;;  %v2428_v7 = vld [vmem:[%s3075_s4 + $0x48] sm:$0xff]  ;;  %v2437_v8 = vld [vmem:[%s3075_s4 + $0x40] sm:$0xff]  ;;  %v2446_v9 = vld [vmem:[%s3075_s4 + $0x38] sm:$0xff] }
   0x4   :  { %89 = vmatpush1.msra.mxu0 %v2383_v2  ;;  %194 = vmatpush1.msra.mxu1 %v2383_v2  ;;  %v2455_v10 = vld [vmem:[%s3075_s4 + $0x30] sm:$0xff] }
   0x5   :  { %90 = vmatprep.subr.mxu0 %v2305_v1  ;;  %195 = vmatprep.subr.mxu1 %v2305_v1 }
   0x6   :  { %91 = vmatpush1.msra.mxu0 %v2392_v3  ;;  %196 = vmatpush1.msra.mxu1 %v2392_v3 }
   0x7   :  { %92 = vmatprep.subr.mxu0 %v2305_v1  ;;  %197 = vmatprep.subr.mxu1 %v2305_v1 }
   0x8   :  { %93 = vmatpush1.msra.mxu0 %v2401_v4  ;;  %198 = vmatpush1.msra.mxu1 %v2401_v4 }
   0x9   :  { %94 = vmatprep.subr.mxu0 %v2305_v1  ;;  %199 = vmatprep.subr.mxu1 %v2305_v1 }
   0xa   :  { %95 = vmatpush1.msra.mxu0 %v2410_v5  ;;  %200 = vmatpush1.msra.mxu1 %v2410_v5 }
   0xb   :  { %96 = vmatprep.subr.mxu0 %v2305_v1  ;;  %201 = vmatprep.subr.mxu1 %v2305_v1 }
   0xc   :  { %97 = vmatpush1.msra.mxu0 %v2419_v6  ;;  %202 = vmatpush1.msra.mxu1 %v2419_v6 }
   0xd   :  { %98 = vmatprep.subr.mxu0 %v2305_v1  ;;  %203 = vmatprep.subr.mxu1 %v2305_v1 }
   0xe   :  { %99 = vmatpush1.msra.mxu0 %v2428_v7  ;;  %204 = vmatpush1.msra.mxu1 %v2428_v7 }
   0xf   :  { %100 = vmatprep.subr.mxu0 %v2305_v1  ;;  %205 = vmatprep.subr.mxu1 %v2305_v1 }
  0x10   :  { %101 = vmatpush1.msra.mxu0 %v2437_v8  ;;  %206 = vmatpush1.msra.mxu1 %v2437_v8 }
  0x11   :  { %102 = vmatprep.subr.mxu0 %v2305_v1  ;;  %207 = vmatprep.subr.mxu1 %v2305_v1 }
  0x12   :  { %17 = vsyncpa [#allocation3], 0  ;;  %103 = vmatpush1.msra.mxu0 %v2446_v9  ;;  %208 = vmatpush1.msra.mxu1 %v2446_v9  ;;  %v2464_v11 = vld [vmem:[%s3075_s4 + $0x28] sm:$0xff]  ;;  %v2473_v12 = vld [vmem:[%s3075_s4 + $0x20] sm:$0xff]  ;;  %vm82_vm0 = vcmask 1045504   ;;  %vm69_vm1 = vcmask 179200  }
  0x13   :  { %104 = vmatprep.subr.mxu0 %v2305_v1  ;;  %209 = vmatprep.subr.mxu1 %v2305_v1  ;;  %v2482_v13 = vld [vmem:[%s3075_s4 + $0x18] sm:$0xff]  ;;  %v2491_v14 = vld [vmem:[%s3075_s4 + $0x10] sm:$0xff]  ;;  %v2500_v15 = vld [vmem:[%s3075_s4 + $0x8] sm:$0xff]  ;;  %vm2306_vm2 = vmmov 0   ;;  %vm520_vm3 = vcmask 130048   ;;  %vm1871_vm4 = vcmask 1043456  }
  0x14   :  { %105 = vmatpush1.msra.mxu0 %v2455_v10  ;;  %210 = vmatpush1.msra.mxu1 %v2455_v10  ;;  %v2509_v16 = vld [vmem:[%s3075_s4] sm:$0xff]  ;;  %v2518_v17 = vld [vmem:[%s3075_s4 + $0x90] sm:$0x3f]  ;;  %v2527_v18 = vld [vmem:[%s3075_s4 + $0x88] sm:$0xff]  ;;  %vm1774_vm5 = vcmask 982016   ;;  %vm1867_vm6 = vcmask 687104  }
  0x15   :  { %106 = vmatprep.subr.mxu0 %v2305_v1  ;;  %211 = vmatprep.subr.mxu1 %v2305_v1  ;;  %v2538_v19 = vld [vmem:[%s3075_s4 + $0x80] sm:$0xff]  ;;  %v62_v20 = vld [vmem:[%s3071_s0 + $0x8] sm:$0xff]  ;;  %v64_v24 = vld [vmem:[%s3071_s0 + $0x18] sm:$0xff]  ;;  %s2307_s25 = smov [#allocation2]   ;;  %vm1945_vm7 = vcmask 74752  }
  0x16   :  { %107 = vmatpush1.msra.mxu0 %v2464_v11  ;;  %212 = vmatpush1.msra.mxu1 %v2464_v11  ;;  %v172_v21 = vld [vmem:[%s3072_s1 + $0x8] sm:$0xff]  ;;  %v61_v22 = vld [vmem:[%s3071_s0] sm:$0xff]  ;;  %v174_v25 = vld [vmem:[%s3072_s1 + $0x18] sm:$0xff]  ;;  %s1953_s26 = sshll.u32 %s2307_s25, 4  ;;  %s1954_s26 = int_to_ptr.vmem [resolvable:$true] %s1953_s26 }
  0x17   :  { %108 = vmatprep.subr.mxu0 %v2305_v1  ;;  %213 = vmatprep.subr.mxu1 %v2305_v1  ;;  %v171_v23 = vld [vmem:[%s3072_s1] sm:$0xff]  ;;  %v63_v26 = vld [vmem:[%s3071_s0 + $0x10] sm:$0xff]  ;;  %v66_v28 = vld [vmem:[%s3071_s0 + $0x28] sm:$0xff]  ;;  %p2288_p1 = scmp.lt.s32.totalorder %s1954_s26, %s1954_s26 }
  0x18   :  { %109 = vmatpush1.msra.mxu0 %v2473_v12  ;;  %214 = vmatpush1.msra.mxu1 %v2473_v12  ;;  %v173_v27 = vld [vmem:[%s3072_s1 + $0x10] sm:$0xff]  ;;  %v176_v29 = vld [vmem:[%s3072_s1 + $0x28] sm:$0xff]  ;;  %v65_v30 = vld [vmem:[%s3071_s0 + $0x20] sm:$0xff] }
  0x19   :  { %110 = vmatprep.subr.mxu0 %v2305_v1  ;;  %215 = vmatprep.subr.mxu1 %v2305_v1  ;;  %v175_v31 = vld [vmem:[%s3072_s1 + $0x20] sm:$0xff]  ;;  %v68_v32 = vld [vmem:[%s3071_s0 + $0x38] sm:$0xff]  ;;  %v67_v34 = vld [vmem:[%s3071_s0 + $0x30] sm:$0xff] }
  0x1a   :  { %111 = vmatpush1.msra.mxu0 %v2482_v13  ;;  %216 = vmatpush1.msra.mxu1 %v2482_v13  ;;  %v178_v33 = vld [vmem:[%s3072_s1 + $0x38] sm:$0xff]  ;;  %v177_v35 = vld [vmem:[%s3072_s1 + $0x30] sm:$0xff]  ;;  %v281_v36 = vld [vmem:[%s3073_s2 + $0x8] sm:$0xff] }
  0x1b   :  { %112 = vmatprep.subr.mxu0 %v2305_v1  ;;  %217 = vmatprep.subr.mxu1 %v2305_v1  ;;  %v386_v37 = vld [vmem:[%s3074_s3 + $0x8] sm:$0xff]  ;;  %v280_v38 = vld [vmem:[%s3073_s2] sm:$0xff]  ;;  %v283_v40 = vld [vmem:[%s3073_s2 + $0x18] sm:$0xff] }
  0x1c   :  { %113 = vmatpush1.msra.mxu0 %v2491_v14  ;;  %218 = vmatpush1.msra.mxu1 %v2491_v14  ;;  %v385_v39 = vld [vmem:[%s3074_s3] sm:$0xff]  ;;  %v388_v41 = vld [vmem:[%s3074_s3 + $0x18] sm:$0xff]  ;;  %v282_v42 = vld [vmem:[%s3073_s2 + $0x10] sm:$0xff] }
  0x1d   :  { %114 = vmatprep.subr.mxu0 %v2305_v1  ;;  %219 = vmatprep.subr.mxu1 %v2305_v1  ;;  %v387_v43 = vld [vmem:[%s3074_s3 + $0x10] sm:$0xff]  ;;  %v285_v44 = vld [vmem:[%s3073_s2 + $0x28] sm:$0xff]  ;;  %v284_v46 = vld [vmem:[%s3073_s2 + $0x20] sm:$0xff] }
  0x1e   :  { %115 = vmatpush1.msra.mxu0 %v2500_v15  ;;  %220 = vmatpush1.msra.mxu1 %v2500_v15  ;;  %v390_v45 = vld [vmem:[%s3074_s3 + $0x28] sm:$0xff]  ;;  %v389_v47 = vld [vmem:[%s3074_s3 + $0x20] sm:$0xff]  ;;  %v287_v48 = vld [vmem:[%s3073_s2 + $0x38] sm:$0xff] }
  0x1f   :  { %116 = vmatprep.subr.mxu0 %v2305_v1  ;;  %221 = vmatprep.subr.mxu1 %v2305_v1  ;;  %v392_v49 = vld [vmem:[%s3074_s3 + $0x38] sm:$0xff]  ;;  %v286_v50 = vld [vmem:[%s3073_s2 + $0x30] sm:$0xff]  ;;  %v1987_v53 = vld [vmem:[%s3077_s6 + $0x28] sm:$0xff] }
  0x20   :  { %117 = vmatpush1.msra.mxu0 %v2509_v16  ;;  %222 = vmatpush1.msra.mxu1 %v2509_v16  ;;  %v391_v51 = vld [vmem:[%s3074_s3 + $0x30] sm:$0xff]  ;;  %v1983_v52 = vld [vmem:[%s3077_s6 + $0x18] sm:$0xff]  ;;  %v1986_v55 = vld [vmem:[%s3077_s6 + $0x20] sm:$0xff] }
  0x21   :  { %144 = vmatprep.subr.mxu0 %v2305_v1  ;;  %249 = vmatprep.subr.mxu1 %v2305_v1  ;;  %v1982_v54 = vld [vmem:[%s3077_s6 + $0x10] sm:$0xff] }
  0x22   :  { %1961 = vmatpush2.msk.msra.mxu0 %vm82_vm0, %v2518_v17  ;;  %1966 = vmatpush2.msk.msra.mxu1 %vm82_vm0, %v2518_v17 }
  0x23   :  { %146 = vmatprep.subr.mxu0 %v2305_v1  ;;  %251 = vmatprep.subr.mxu1 %v2305_v1 }
  0x24   :  { %147 = vmatpush2.msra.mxu0 %v2527_v18  ;;  %252 = vmatpush2.msra.mxu1 %v2527_v18 }
  0x25   :  { %148 = vmatprep.subr.mxu0 %v2305_v1  ;;  %253 = vmatprep.subr.mxu1 %v2305_v1 }
  0x26   :  { %149 = vmatpush2.msra.mxu0 %v2538_v19  ;;  %1962 = vmatprep.mubr.msk.f32.mxu0 %vm69_vm1, %v62_v20 }
  0x27   :  { %254 = vmatpush2.msra.mxu1 %v2538_v19  ;;  %1967 = vmatprep.mubr.msk.f32.mxu1 %vm69_vm1, %v172_v21 }
  0x28   :  { %151 = vmatmul.mubr.f32.vlgmr.msra.gmra.mxu0 %v61_v22  ;;  %256 = vmatmul.mubr.f32.vlgmr.msra.gmra.mxu1 %v171_v23 }
  0x29   :  { %300 = vmatprep.subr.mxu0 %v2305_v1  ;;  %405 = vmatprep.subr.mxu1 %v2305_v1 }
  0x2a   :  { %301 = vmatpush1.msra.mxu0 %v2376_v0  ;;  %406 = vmatpush1.msra.mxu1 %v2376_v0 }
  0x2b   :  { %302 = vmatprep.subr.mxu0 %v2305_v1  ;;  %407 = vmatprep.subr.mxu1 %v2305_v1 }
  0x2c   :  { %303 = vmatpush1.msra.mxu0 %v2383_v2  ;;  %408 = vmatpush1.msra.mxu1 %v2383_v2 }
  0x2d   :  { %304 = vmatprep.subr.mxu0 %v2305_v1  ;;  %409 = vmatprep.subr.mxu1 %v2305_v1 }
  0x2e   :  { %305 = vmatpush1.msra.mxu0 %v2392_v3  ;;  %410 = vmatpush1.msra.mxu1 %v2392_v3 }
  0x2f   :  { %306 = vmatprep.subr.mxu0 %v2305_v1  ;;  %411 = vmatprep.subr.mxu1 %v2305_v1 }
  0x30   :  { %307 = vmatpush1.msra.mxu0 %v2401_v4  ;;  %412 = vmatpush1.msra.mxu1 %v2401_v4 }
  0x31   :  { %308 = vmatprep.subr.mxu0 %v2305_v1  ;;  %413 = vmatprep.subr.mxu1 %v2305_v1 }
  0x32   :  { %309 = vmatpush1.msra.mxu0 %v2410_v5  ;;  %414 = vmatpush1.msra.mxu1 %v2410_v5 }
  0x33   :  { %310 = vmatprep.subr.mxu0 %v2305_v1  ;;  %415 = vmatprep.subr.mxu1 %v2305_v1 }
  0x34   :  { %311 = vmatpush1.msra.mxu0 %v2419_v6  ;;  %416 = vmatpush1.msra.mxu1 %v2419_v6 }
  0x35   :  { %312 = vmatprep.subr.mxu0 %v2305_v1  ;;  %417 = vmatprep.subr.mxu1 %v2305_v1 }
  0x36   :  { %313 = vmatpush1.msra.mxu0 %v2428_v7  ;;  %418 = vmatpush1.msra.mxu1 %v2428_v7 }
  0x37   :  { %314 = vmatprep.subr.mxu0 %v2305_v1  ;;  %419 = vmatprep.subr.mxu1 %v2305_v1 }
  0x38   :  { %315 = vmatpush1.msra.mxu0 %v2437_v8  ;;  %420 = vmatpush1.msra.mxu1 %v2437_v8 }
  0x39   :  { %316 = vmatprep.subr.mxu0 %v2305_v1  ;;  %421 = vmatprep.subr.mxu1 %v2305_v1 }
  0x3a   :  { %317 = vmatpush1.msra.mxu0 %v2446_v9  ;;  %422 = vmatpush1.msra.mxu1 %v2446_v9 }
  0x3b   :  { %318 = vmatprep.subr.mxu0 %v2305_v1  ;;  %423 = vmatprep.subr.mxu1 %v2305_v1 }
  0x3c   :  { %319 = vmatpush1.msra.mxu0 %v2455_v10  ;;  %424 = vmatpush1.msra.mxu1 %v2455_v10 }
  0x3d   :  { %320 = vmatprep.subr.mxu0 %v2305_v1  ;;  %425 = vmatprep.subr.mxu1 %v2305_v1 }
  0x3e   :  { %321 = vmatpush1.msra.mxu0 %v2464_v11  ;;  %426 = vmatpush1.msra.mxu1 %v2464_v11 }
  0x3f   :  { %322 = vmatprep.subr.mxu0 %v2305_v1  ;;  %427 = vmatprep.subr.mxu1 %v2305_v1 }
  0x40   :  { %1963 = vmatprep.mubr.msk.f32.mxu0 %vm69_vm1, %v64_v24  ;;  %1968 = vmatprep.mubr.msk.f32.mxu1 %vm69_vm1, %v174_v25 }
  0x41   :  { %323 = vmatpush1.msra.mxu0 %v2473_v12  ;;  %428 = vmatpush1.msra.mxu1 %v2473_v12 }
  0x42   :  { %156 = vmatmul.mubr.f32.gmra.mxu0 %v63_v26  ;;  %261 = vmatmul.mubr.f32.gmra.mxu1 %v173_v27 }
  0x43   :  { %324 = vmatprep.subr.mxu0 %v2305_v1  ;;  %429 = vmatprep.subr.mxu1 %v2305_v1 }
  0x44   :  { %325 = vmatpush1.msra.mxu0 %v2482_v13  ;;  %430 = vmatpush1.msra.mxu1 %v2482_v13  ;;  %v2769_v13 = vld [vmem:[%s3076_s5] ss:$0 sm:$0xff] }
  0x45   :  { %326 = vmatprep.subr.mxu0 %v2305_v1  ;;  %431 = vmatprep.subr.mxu1 %v2305_v1 }
  0x46   :  { %1964 = vmatprep.mubr.msk.f32.mxu0 %vm69_vm1, %v66_v28  ;;  %1969 = vmatprep.mubr.msk.f32.mxu1 %vm69_vm1, %v176_v29 }
  0x47   :  { %327 = vmatpush1.msra.mxu0 %v2491_v14  ;;  %432 = vmatpush1.msra.mxu1 %v2491_v14 }
  0x48   :  { %161 = vmatmul.mubr.f32.gmra.mxu0 %v65_v30  ;;  %266 = vmatmul.mubr.f32.gmra.mxu1 %v175_v31  ;;  %v514_v30 = vld [vmem:[%s3077_s6 + $0x8] sm:$0xff] }
  0x49   :  { %328 = vmatprep.subr.mxu0 %v2305_v1  ;;  %433 = vmatprep.subr.mxu1 %v2305_v1  ;;  %v1993_v31 = vld [vmem:[%s3077_s6 + $0x48] sm:$0xff] }
  0x4a   :  { %329 = vmatpush1.msra.mxu0 %v2500_v15  ;;  %434 = vmatpush1.msra.mxu1 %v2500_v15 }
  0x4b   :  { %330 = vmatprep.subr.mxu0 %v2305_v1  ;;  %435 = vmatprep.subr.mxu1 %v2305_v1 }
  0x4c   :  { %1965 = vmatprep.mubr.msk.f32.mxu0 %vm69_vm1, %v68_v32  ;;  %1970 = vmatprep.mubr.msk.f32.mxu1 %vm69_vm1, %v178_v33 }
  0x4d   :  { %331 = vmatpush1.msra.mxu0 %v2509_v16  ;;  %436 = vmatpush1.msra.mxu1 %v2509_v16 }
  0x4e   :  { %166 = vmatmul.mubr.f32.gmra.mxu0 %v67_v34  ;;  %271 = vmatmul.mubr.f32.gmra.mxu1 %v177_v35  ;;  %v513_v35 = vld [vmem:[%s3077_s6] sm:$0xff] }
  0x4f   :  { %358 = vmatprep.subr.mxu0 %v2305_v1  ;;  %463 = vmatprep.subr.mxu1 %v2305_v1 }
  0x50   :  { %1971 = vmatpush2.msk.msra.mxu0 %vm82_vm0, %v2518_v17  ;;  %1976 = vmatpush2.msk.msra.mxu1 %vm82_vm0, %v2518_v17 }
  0x51   :  { %360 = vmatprep.subr.mxu0 %v2305_v1  ;;  %465 = vmatprep.subr.mxu1 %v2305_v1 }
  0x52   :  { %361 = vmatpush2.msra.mxu0 %v2527_v18  ;;  %466 = vmatpush2.msra.mxu1 %v2527_v18 }
  0x53   :  { %362 = vmatprep.subr.mxu0 %v2305_v1  ;;  %467 = vmatprep.subr.mxu1 %v2305_v1 }
  0x54   :  { %363 = vmatpush2.msra.mxu0 %v2538_v19  ;;  %1972 = vmatprep.mubr.msk.f32.mxu0 %vm69_vm1, %v281_v36 }
  0x55   :  { %468 = vmatpush2.msra.mxu1 %v2538_v19  ;;  %1977 = vmatprep.mubr.msk.f32.mxu1 %vm69_vm1, %v386_v37 }
  0x56   :  { %365 = vmatmul.mubr.f32.vlgmr.msra.gmra.mxu0 %v280_v38  ;;  %470 = vmatmul.mubr.f32.vlgmr.msra.gmra.mxu1 %v385_v39  ;;  %v1992_v38 = vld [vmem:[%s3077_s6 + $0x40] sm:$0xff]  ;;  %v1990_v39 = vld [vmem:[%s3077_s6 + $0x38] sm:$0xff] }
  0x57   :  { %1973 = vmatprep.mubr.msk.f32.mxu0 %vm69_vm1, %v283_v40  ;;  %1978 = vmatprep.mubr.msk.f32.mxu1 %vm69_vm1, %v388_v41 }
  0x58   :  { %2110 = vmatprep.subr.mxu1 %v2305_v1  ;;  %2124 = vmatprep.subr.mxu0 %v2305_v1 }
  0x59   :  { %2111 = vmatpush3.msra.mxu1 %v1983_v52  ;;  %2125 = vmatpush3.msra.mxu0 %v1987_v53  ;;  %v2005_v52 = vld [vmem:[%s3077_s6 + $0x88] sm:$0xff]  ;;  %v1995_v53 = vld [vmem:[%s3077_s6 + $0x50] sm:$0xff] }
  0x5a   :  { %370 = vmatmul.mubr.f32.gmra.mxu0 %v282_v42  ;;  %475 = vmatmul.mubr.f32.gmra.mxu1 %v387_v43 }
  0x5b   :  { %1974 = vmatprep.mubr.msk.f32.mxu0 %vm69_vm1, %v285_v44  ;;  %1979 = vmatprep.mubr.msk.f32.mxu1 %vm69_vm1, %v390_v45  ;;  %v1999_v44 = vld [vmem:[%s3077_s6 + $0x68] sm:$0xff]  ;;  %v1989_v45 = vld [vmem:[%s3077_s6 + $0x30] sm:$0xff] }
  0x5c   :  { %2112 = vmatprep.subr.mxu1 %v2305_v1  ;;  %2126 = vmatprep.subr.mxu0 %v2305_v1 }
  0x5d   :  { %2113 = vmatpush3.msra.mxu1 %v1982_v54  ;;  %2127 = vmatpush3.msra.mxu0 %v1986_v55  ;;  %v2004_v55 = vld [vmem:[%s3077_s6 + $0x80] sm:$0xff] }
  0x5e   :  { %375 = vmatmul.mubr.f32.gmra.mxu0 %v284_v46  ;;  %480 = vmatmul.mubr.f32.gmra.mxu1 %v389_v47  ;;  %v1998_v47 = vld [vmem:[%s3077_s6 + $0x60] sm:$0xff] }
  0x5f   :  { %1975 = vmatprep.mubr.msk.f32.mxu0 %vm69_vm1, %v287_v48  ;;  %1980 = vmatprep.mubr.msk.f32.mxu1 %vm69_vm1, %v392_v49 }
  0x60   :  { %2117 = vmatprep.subr.mxu1 %v2305_v1  ;;  %2138 = vmatprep.subr.mxu0 %v2305_v1 }
  0x62   :  { %380 = vmatmul.mubr.f32.gmra.mxu0 %v286_v50  ;;  %485 = vmatmul.mubr.f32.gmra.mxu1 %v391_v51  ;;  %v1996_v50 = vld [vmem:[%s3077_s6 + $0x58] sm:$0xff] }
  0x63   :  { %2114 = vmatprep.mubr.msk.f32.mxu1 %vm2306_vm2, %v2305_v1  ;;  %2128 = vmatprep.mubr.msk.f32.mxu0 %vm2306_vm2, %v2305_v1 }
  0xe8   :  { %v152_v56 = vpop.f32.mrf.mxu0  ;;  %v257_v57 = vpop.f32.mrf.mxu1 }
  0xe9   :  { %v276_v11 = vmax.f32 %v152_v56, %v257_v57  ;;  %v2002_v57 = vld [vmem:[%s3077_s6 + $0x78] sm:$0xff] }
  0xea   :  { %v154_v58 = vpop.f32.mrf.mxu0  ;;  %v259_v59 = vpop.f32.mrf.mxu1 }
 0x102   :  { %v157_v60 = vpop.f32.mrf.mxu0  ;;  %v262_v61 = vpop.f32.mrf.mxu1 }
 0x103   :  { %v277_v19 = vmax.f32 %v157_v60, %v262_v61  ;;  %v2011_v60 = vld [vmem:[%s3077_s6 + $0xa8] sm:$0xff]  ;;  %v2001_v61 = vld [vmem:[%s3077_s6 + $0x70] sm:$0xff] }
 0x104   :  { %v159_v62 = vpop.f32.mrf.mxu0  ;;  %v264_v63 = vpop.f32.mrf.mxu1 }
 0x105   :  { %v2010_v63 = vld [vmem:[%s3077_s6 + $0xa0] sm:$0xff] }
 0x108   :  { %v2758_v0 = vpop.f32.mrf.mxu0  ;;  %v2760_v2 = vpop.f32.mrf.mxu1 }
 0x109   :  { %v278_v46 = vmax.f32 %v2758_v0, %v2760_v2 }
 0x10a   :  { %v164_v3 = vpop.f32.mrf.mxu0  ;;  %v269_v4 = vpop.f32.mrf.mxu1 }
 0x10b   :  { %v2008_v3 = vld [vmem:[%s3077_s6 + $0x98] sm:$0xff] }
 0x10e   :  { %v2762_v5 = vpop.f32.mrf.mxu0  ;;  %v2764_v6 = vpop.f32.mrf.mxu1 }
 0x10f   :  { %v279_v62 = vmax.f32 %v2762_v5, %v2764_v6  ;;  %v2017_v5 = vld [vmem:[%s3077_s6 + $0xc8] sm:$0xff]  ;;  %v2007_v6 = vld [vmem:[%s3077_s6 + $0x90] sm:$0xff] }
 0x110   :  { %v169_v7 = vpop.f32.mrf.mxu0  ;;  %v274_v8 = vpop.f32.mrf.mxu1 }
 0x111   :  { %v2016_v8 = vld [vmem:[%s3077_s6 + $0xc0] sm:$0xff] }
 0x116   :  { %v366_v9 = vpop.f32.mrf.mxu0  ;;  %v471_v10 = vpop.f32.mrf.mxu1 }
 0x117   :  { %v490_v12 = vmax.f32 %v366_v9, %v471_v10  ;;  %v2014_v10 = vld [vmem:[%s3077_s6 + $0xb8] sm:$0xff] }
 0x118   :  { %v368_v14 = vpop.f32.mrf.mxu0  ;;  %v473_v15 = vpop.f32.mrf.mxu1 }
 0x119   :  { %v494_v16 = vmax.f32 %v276_v11, %v490_v12  ;;  %v2023_v12 = vld [vmem:[%s3077_s6 + $0xe8] sm:$0xff]  ;;  %v2022_v14 = vld [vmem:[%s3077_s6 + $0xe0] sm:$0xff] }
 0x11a   :  { %v371_v17 = vpop.f32.mrf.mxu0  ;;  %v476_v18 = vpop.f32.mrf.mxu1 }
 0x11b   :  { %v505_v20 = vadd.f32 %v2769_v13, %v494_v16  ;;  %v491_v21 = vmax.f32 %v371_v17, %v476_v18  ;;  %v2020_v16 = vld [vmem:[%s3077_s6 + $0xd8] sm:$0xff]  ;;  %v2019_v18 = vld [vmem:[%s3077_s6 + $0xd0] sm:$0xff] }
 0x11c   :  { %v373_v22 = vpop.f32.mrf.mxu0  ;;  %v478_v23 = vpop.f32.mrf.mxu1 }
 0x11d   :  { %v509_v24 = vmax.f32 %v505_v20, 0.0  ;;  %v495_v25 = vmax.f32 %v277_v19, %v491_v21  ;;  %v2026_v20 = vld [vmem:[%s3077_s6 + $0xf8] sm:$0xff]  ;;  %v2025_v21 = vld [vmem:[%s3077_s6 + $0xf0] sm:$0xff] }
 0x11e   :  { %v376_v26 = vpop.f32.mrf.mxu0  ;;  %v481_v27 = vpop.f32.mrf.mxu1  ;;  %v1766_v23 = vld [vmem:[%s3079_s8 + $0x70] sm:$0xff] }
 0x11f   :  { %v519_v28 = vrot.slane %v509_v24, 2  ;;  %v668_v29 = vrot.slane %v509_v24, 4  ;;  %v506_v34 = vadd.f32 %v2769_v13, %v495_v25  ;;  %v492_v43 = vmax.f32 %v376_v26, %v481_v27  ;;  %v1764_v25 = vld [vmem:[%s3079_s8 + $0x60] sm:$0xff]  ;;  %v1763_v26 = vld [vmem:[%s3079_s8 + $0x58] sm:$0xff]  ;;  %v1762_v27 = vld [vmem:[%s3079_s8 + $0x50] sm:$0xff] }
 0x120   :  { %v378_v32 = vpop.f32.mrf.mxu0  ;;  %v483_v33 = vpop.f32.mrf.mxu1  ;;  %v745_v49 = vrot.slane %v509_v24, 6 }
 0x121   :  { %2115 = vmatmul.mubr.msk.f32.vlgmr.msra.gmra.mxu1 %vm520_vm3, %v519_v28  ;;  %2129 = vmatmul.mubr.msk.f32.vlgmr.msra.gmra.mxu0 %vm520_vm3, %v668_v29  ;;  %v2798_v42 = vmax.f32 %v506_v34, 0.0  ;;  %v496_v48 = vmax.f32 %v278_v46, %v492_v43  ;;  %v1761_v28 = vld [vmem:[%s3079_s8 + $0x48] sm:$0xff]  ;;  %v1760_v29 = vld [vmem:[%s3079_s8 + $0x40] sm:$0xff]  ;;  %v1755_v34 = vld [vmem:[%s3079_s8 + $0x18] sm:$0xff] }
 0x122   :  { %2118 = vmatpush3.msra.mxu1 %v514_v30  ;;  %v2784_v36 = vpop.f32.mrf.mxu0  ;;  %v2786_v37 = vpop.f32.mrf.mxu1  ;;  %2139 = vmatpush3.msra.mxu0 %v1993_v31  ;;  %v1759_v30 = vld [vmem:[%s3079_s8 + $0x38] sm:$0xff]  ;;  %v1758_v31 = vld [vmem:[%s3079_s8 + $0x30] sm:$0xff]  ;;  %v1757_v32 = vld [vmem:[%s3079_s8 + $0x28] sm:$0xff] }
 0x123   :  { %2119 = vmatprep.subr.mxu1 %v2305_v1  ;;  %2140 = vmatprep.subr.mxu0 %v2305_v1  ;;  %v976_v51 = vrot.slane %v2798_v42, 4  ;;  %v507_v54 = vadd.f32 %v2769_v13, %v496_v48  ;;  %v899_v56 = vrot.slane %v2798_v42, 2  ;;  %v493_v59 = vmax.f32 %v2784_v36, %v2786_v37  ;;  %v1756_v33 = vld [vmem:[%s3079_s8 + $0x20] sm:$0xff]  ;;  %v1753_v36 = vld [vmem:[%s3079_s8 + $0x8] sm:$0xff] }
 0x124   :  { %2120 = vmatpush3.msra.mxu1 %v513_v35  ;;  %2121 = vmatprep.mubr.msk.f32.mxu1 %vm2306_vm2, %v2305_v1  ;;  %v383_v40 = vpop.f32.mrf.mxu0  ;;  %v488_v41 = vpop.f32.mrf.mxu1  ;;  %v1053_v2 = vrot.slane %v2798_v42, 6  ;;  %v1754_v35 = vld [vmem:[%s3079_s8 + $0x10] sm:$0xff]  ;;  %v1752_v37 = vld [vmem:[%s3079_s8] sm:$0xff]  ;;  %v1854_v43 = vld [vmem:[%s3081_s10 + $0x28] sm:$0xff] }
 0x125   :  { %2131 = vmatprep.subr.mxu1 %v2305_v1  ;;  %2141 = vmatpush3.msra.mxu0 %v1992_v38  ;;  %v2850_v58 = vmax.f32 %v507_v54, 0.0  ;;  %v497_v0 = vmax.f32 %v279_v62, %v493_v59  ;;  %v1859_v38 = vld [vmem:[%s3081_s10 + $0x50] sm:$0xf]  ;;  %v1857_v40 = vld [vmem:[%s3081_s10 + $0x40] sm:$0xff]  ;;  %v1856_v41 = vld [vmem:[%s3081_s10 + $0x38] sm:$0xff] }
 0x126   :  { %2142 = vmatprep.mubr.msk.f32.mxu0 %vm2306_vm2, %v2305_v1  ;;  %2122 = vmatmul.mubr.msk.f32.vlgmr.msra.gmra.mxu1 %vm520_vm3, %v509_v24  ;;  %v1765_v24 = vld [vmem:[%s3079_s8 + $0x68] sm:$0xff] }
 0x127   :  { %2132 = vmatpush3.msra.mxu1 %v1990_v39  ;;  %2143 = vmatmul.mubr.msk.f32.vlgmr.msra.gmra.mxu0 %vm520_vm3, %v2798_v42  ;;  %v1284_v4 = vrot.slane %v2850_v58, 4  ;;  %v508_v7 = vadd.f32 %v2769_v13, %v497_v0  ;;  %v1207_v9 = vrot.slane %v2850_v58, 2  ;;  %v2013_v13 = vld [vmem:[%s3077_s6 + $0xb0] sm:$0xff]  ;;  %v1361_v15 = vrot.slane %v2850_v58, 6  ;;  %v1858_v39 = vld [vmem:[%s3081_s10 + $0x48] sm:$0xff] }
 0x128   :  { %2152 = vmatprep.subr.mxu0 %v2305_v1  ;;  %2133 = vmatprep.subr.mxu1 %v2305_v1  ;;  %v1855_v42 = vld [vmem:[%s3081_s10 + $0x30] sm:$0xff] }
 0x129   :  { %2153 = vmatpush3.msra.mxu0 %v1999_v44  ;;  %2134 = vmatpush3.msra.mxu1 %v1989_v45  ;;  %v512_v11 = vmax.f32 %v508_v7, 0.0  ;;  %v1853_v44 = vld [vmem:[%s3081_s10 + $0x20] sm:$0xff]  ;;  %v1852_v45 = vld [vmem:[%s3081_s10 + $0x18] sm:$0xff] }
 0x12a   :  { %2154 = vmatprep.subr.mxu0 %v2305_v1  ;;  %2135 = vmatprep.mubr.msk.f32.mxu1 %vm2306_vm2, %v2305_v1 }
 0x12b   :  { %2145 = vmatprep.subr.mxu1 %v2305_v1  ;;  %2155 = vmatpush3.msra.mxu0 %v1998_v47  ;;  %v1592_v17 = vrot.slane %v512_v11, 4  ;;  %v1515_v19 = vrot.slane %v512_v11, 2  ;;  %v1669_v22 = vrot.slane %v512_v11, 6 }
 0x12c   :  { %2156 = vmatprep.mubr.msk.f32.mxu0 %vm2306_vm2, %v2305_v1  ;;  %2136 = vmatmul.mubr.msk.f32.vlgmr.msra.gmra.mxu1 %vm520_vm3, %v745_v49 }
 0x12d   :  { %2146 = vmatpush3.msra.mxu1 %v1996_v50  ;;  %2157 = vmatmul.mubr.msk.f32.vlgmr.msra.gmra.mxu0 %vm520_vm3, %v976_v51 }
 0x12e   :  { %2166 = vmatprep.subr.mxu0 %v2305_v1  ;;  %2147 = vmatprep.subr.mxu1 %v2305_v1 }
 0x12f   :  { %2167 = vmatpush3.msra.mxu0 %v2005_v52  ;;  %2148 = vmatpush3.msra.mxu1 %v1995_v53 }
 0x130   :  { %2168 = vmatprep.subr.mxu0 %v2305_v1  ;;  %2149 = vmatprep.mubr.msk.f32.mxu1 %vm2306_vm2, %v2305_v1 }
 0x131   :  { %2159 = vmatprep.subr.mxu1 %v2305_v1  ;;  %2169 = vmatpush3.msra.mxu0 %v2004_v55 }
 0x132   :  { %2170 = vmatprep.mubr.msk.f32.mxu0 %vm2306_vm2, %v2305_v1  ;;  %2150 = vmatmul.mubr.msk.f32.vlgmr.msra.gmra.mxu1 %vm520_vm3, %v899_v56 }
 0x133   :  { %2160 = vmatpush3.msra.mxu1 %v2002_v57  ;;  %2171 = vmatmul.mubr.msk.f32.vlgmr.msra.gmra.mxu0 %vm520_vm3, %v2850_v58 }
 0x134   :  { %2180 = vmatprep.subr.mxu0 %v2305_v1  ;;  %2161 = vmatprep.subr.mxu1 %v2305_v1 }
 0x135   :  { %2181 = vmatpush3.msra.mxu0 %v2011_v60  ;;  %2162 = vmatpush3.msra.mxu1 %v2001_v61 }
 0x136   :  { %2182 = vmatprep.subr.mxu0 %v2305_v1  ;;  %2163 = vmatprep.mubr.msk.f32.mxu1 %vm2306_vm2, %v2305_v1 }
 0x137   :  { %2173 = vmatprep.subr.mxu1 %v2305_v1  ;;  %2183 = vmatpush3.msra.mxu0 %v2010_v63 }
 0x138   :  { %2184 = vmatprep.mubr.msk.f32.mxu0 %vm2306_vm2, %v2305_v1  ;;  %2164 = vmatmul.mubr.msk.f32.vlgmr.msra.gmra.mxu1 %vm520_vm3, %v1053_v2 }
 0x139   :  { %2174 = vmatpush3.msra.mxu1 %v2008_v3  ;;  %2185 = vmatmul.mubr.msk.f32.vlgmr.msra.gmra.mxu0 %vm520_vm3, %v1284_v4 }
 0x13a   :  { %2194 = vmatprep.subr.mxu0 %v2305_v1  ;;  %2175 = vmatprep.subr.mxu1 %v2305_v1 }
 0x13b   :  { %2195 = vmatpush3.msra.mxu0 %v2017_v5  ;;  %2176 = vmatpush3.msra.mxu1 %v2007_v6 }
 0x13c   :  { %2196 = vmatprep.subr.mxu0 %v2305_v1  ;;  %2177 = vmatprep.mubr.msk.f32.mxu1 %vm2306_vm2, %v2305_v1 }
 0x13d   :  { %2187 = vmatprep.subr.mxu1 %v2305_v1  ;;  %2197 = vmatpush3.msra.mxu0 %v2016_v8 }
 0x13e   :  { %2198 = vmatprep.mubr.msk.f32.mxu0 %vm2306_vm2, %v2305_v1  ;;  %2178 = vmatmul.mubr.msk.f32.vlgmr.msra.gmra.mxu1 %vm520_vm3, %v1207_v9 }
 0x13f   :  { %2188 = vmatpush3.msra.mxu1 %v2014_v10  ;;  %2199 = vmatmul.mubr.msk.f32.vlgmr.msra.gmra.mxu0 %vm520_vm3, %v512_v11 }
 0x140   :  { %2208 = vmatprep.subr.mxu0 %v2305_v1  ;;  %2189 = vmatprep.subr.mxu1 %v2305_v1 }
 0x141   :  { %2209 = vmatpush3.msra.mxu0 %v2023_v12  ;;  %2190 = vmatpush3.msra.mxu1 %v2013_v13 }
 0x142   :  { %2210 = vmatprep.subr.mxu0 %v2305_v1  ;;  %2191 = vmatprep.mubr.msk.f32.mxu1 %vm2306_vm2, %v2305_v1 }
 0x143   :  { %2201 = vmatprep.subr.mxu1 %v2305_v1  ;;  %2211 = vmatpush3.msra.mxu0 %v2022_v14 }
 0x144   :  { %2212 = vmatprep.mubr.msk.f32.mxu0 %vm2306_vm2, %v2305_v1  ;;  %2192 = vmatmul.mubr.msk.f32.vlgmr.msra.gmra.mxu1 %vm520_vm3, %v1361_v15 }
 0x145   :  { %2202 = vmatpush3.msra.mxu1 %v2020_v16  ;;  %2213 = vmatmul.mubr.msk.f32.vlgmr.msra.gmra.mxu0 %vm520_vm3, %v1592_v17 }
 0x146   :  { %2203 = vmatprep.subr.mxu1 %v2305_v1  ;;  %2205 = vmatprep.mubr.msk.f32.mxu1 %vm2306_vm2, %v2305_v1 }
 0x147   :  { %2204 = vmatpush3.msra.mxu1 %v2019_v18  ;;  %2222 = vmatprep.subr.mxu0 %v2305_v1 }
 0x148   :  { %2215 = vmatprep.subr.mxu1 %v2305_v1  ;;  %2206 = vmatmul.mubr.msk.f32.vlgmr.msra.gmra.mxu1 %vm520_vm3, %v1515_v19 }
 0x149   :  { %2216 = vmatpush3.msra.mxu1 %v2026_v20  ;;  %2219 = vmatprep.mubr.msk.f32.mxu1 %vm2306_vm2, %v2305_v1 }
 0x14a   :  { %2217 = vmatprep.subr.mxu1 %v2305_v1  ;;  %2252 = vmatprep.mubr.msk.f32.mxu0 %vm2306_vm2, %v2305_v1 }
 0x14b   :  { %2218 = vmatpush3.msra.mxu1 %v2025_v21  ;;  %2223 = vmatpush3.msra.mxu0 %v1766_v23 }
 0x14c   :  { %2220 = vmatmul.mubr.msk.f32.vlgmr.msra.gmra.mxu1 %vm520_vm3, %v1669_v22  ;;  %2255 = vmatprep.subr.mxu1 %v2305_v1 }
 0x14d   :  { %2277 = vmatprep.mubr.msk.f32.mxu1 %vm2306_vm2, %v2305_v1  ;;  %2224 = vmatprep.subr.mxu0 %v2305_v1 }
 0x14e   :  { %2225 = vmatpush3.msra.mxu0 %v1765_v24  ;;  %2256 = vmatpush3.msk.msra.mxu1 %vm1871_vm4, %v1859_v38 }
 0x14f   :  { %2226 = vmatprep.subr.mxu0 %v2305_v1  ;;  %2257 = vmatprep.subr.mxu1 %v2305_v1 }
 0x150   :  { %2227 = vmatpush3.msra.mxu0 %v1764_v25  ;;  %2258 = vmatpush3.msra.mxu1 %v1858_v39 }
 0x151   :  { %2228 = vmatprep.subr.mxu0 %v2305_v1  ;;  %2259 = vmatprep.subr.mxu1 %v2305_v1 }
 0x152   :  { %2229 = vmatpush3.msra.mxu0 %v1763_v26  ;;  %2260 = vmatpush3.msra.mxu1 %v1857_v40 }
 0x153   :  { %2230 = vmatprep.subr.mxu0 %v2305_v1  ;;  %2261 = vmatprep.subr.mxu1 %v2305_v1 }
 0x154   :  { %2231 = vmatpush3.msra.mxu0 %v1762_v27  ;;  %2262 = vmatpush3.msra.mxu1 %v1856_v41  ;;  %v2031_v41 = vld [vmem:[%s3082_s11] ss:$0 sm:$0xff] }
 0x155   :  { %2232 = vmatprep.subr.mxu0 %v2305_v1  ;;  %2263 = vmatprep.subr.mxu1 %v2305_v1 }
 0x156   :  { %2233 = vmatpush3.msra.mxu0 %v1761_v28  ;;  %2264 = vmatpush3.msra.mxu1 %v1855_v42  ;;  %v2028_v28 = vld [vmem:[%s3078_s7] ss:$0 sm:$0xff] }
 0x157   :  { %2234 = vmatprep.subr.mxu0 %v2305_v1  ;;  %2265 = vmatprep.subr.mxu1 %v2305_v1 }
 0x158   :  { %2235 = vmatpush3.msra.mxu0 %v1760_v29  ;;  %2266 = vmatpush3.msra.mxu1 %v1854_v43 }
 0x159   :  { %2236 = vmatprep.subr.mxu0 %v2305_v1  ;;  %2267 = vmatprep.subr.mxu1 %v2305_v1 }
 0x15a   :  { %2237 = vmatpush3.msra.mxu0 %v1759_v30  ;;  %2268 = vmatpush3.msra.mxu1 %v1853_v44 }
 0x15b   :  { %2238 = vmatprep.subr.mxu0 %v2305_v1  ;;  %2269 = vmatprep.subr.mxu1 %v2305_v1 }
 0x15c   :  { %2239 = vmatpush3.msra.mxu0 %v1758_v31  ;;  %2270 = vmatpush3.msra.mxu1 %v1852_v45 }
 0x15d   :  { %2240 = vmatprep.subr.mxu0 %v2305_v1  ;;  %2271 = vmatprep.subr.mxu1 %v2305_v1 }
 0x15e   :  { %2241 = vmatpush3.msra.mxu0 %v1757_v32 }
 0x15f   :  { %2242 = vmatprep.subr.mxu0 %v2305_v1 }
 0x160   :  { %2243 = vmatpush3.msra.mxu0 %v1756_v33  ;;  %v1851_v33 = vld [vmem:[%s3081_s10 + $0x10] sm:$0xff] }
 0x161   :  { %2244 = vmatprep.subr.mxu0 %v2305_v1  ;;  %2272 = vmatpush3.msra.mxu1 %v1851_v33 }
 0x162   :  { %2245 = vmatpush3.msra.mxu0 %v1755_v34  ;;  %2273 = vmatprep.subr.mxu1 %v2305_v1  ;;  %v1850_v34 = vld [vmem:[%s3081_s10 + $0x8] sm:$0xff] }
 0x163   :  { %2246 = vmatprep.subr.mxu0 %v2305_v1  ;;  %2274 = vmatpush3.msra.mxu1 %v1850_v34 }
 0x164   :  { %2247 = vmatpush3.msra.mxu0 %v1754_v35  ;;  %v1849_v35 = vld [vmem:[%s3081_s10] sm:$0xff]  ;;  %2275 = vmatprep.subr.mxu1 %v2305_v1  ;;  %s2283_s10 = scalar_lea.vmem %s1954_s26, 32 }
 0x165   :  { %2248 = vmatprep.subr.mxu0 %v2305_v1  ;;  %2276 = vmatpush3.msra.mxu1 %v1849_v35  ;;  %p2284_p0 = scmp.ne.s32.totalorder %s1954_s26, %s2283_s10  ;;  %p2289_p2 = scmp.lt.s32.totalorder %s2283_s10, %s2283_s10 }
 0x166   :  { %2249 = vmatpush3.msra.mxu0 %v1753_v36  ;;  %v2029_v36 = vld [vmem:[%s3080_s9] ss:$0 sm:$0xff] }
 0x167   :  { %2250 = vmatprep.subr.mxu0 %v2305_v1  ;;  %p2290_p3 = por %p2289_p2, %p2288_p1 }
 0x168   :  { %2251 = vmatpush3.msra.mxu0 %v1752_v37 }
 0x169   :  { %p2291_p4 = pnand %p2290_p3, %p2284_p0 }
 0x1e1   :  { %v589_v46 = vpop.f32.mrf.mxu1  ;;  %v737_v47 = vpop.f32.mrf.mxu0 }
 0x1e3   :  { %v2116_v48 = vpop.f32.mrf.mxu1  ;;  %v2130_v49 = vpop.f32.mrf.mxu0 }
 0x1e6   :  { %v661_v50 = vpop.f32.mrf.mxu1 }
 0x1e7   :  { %v662_v51 = vadd.f32 %v661_v50, %v589_v46  ;;  %v891_v52 = vpop.f32.mrf.mxu0 }
 0x1e8   :  { %v2123_v53 = vpop.f32.mrf.mxu1 }
 0x1e9   :  { %v2144_v54 = vpop.f32.mrf.mxu0  ;;  %v741_v55 = vadd.f32 %v737_v47, %v662_v51 }
 0x1ec   :  { %v814_v56 = vpop.f32.mrf.mxu1 }
 0x1ed   :  { %v818_v57 = vadd.f32 %v814_v56, %v741_v55  ;;  %v1045_v58 = vpop.f32.mrf.mxu0 }
 0x1ee   :  { %v2137_v59 = vpop.f32.mrf.mxu1 }
 0x1ef   :  { %v2158_v60 = vpop.f32.mrf.mxu0  ;;  %v895_v61 = vadd.f32 %v891_v52, %v818_v57 }
 0x1f2   :  { %v968_v62 = vpop.f32.mrf.mxu1 }
 0x1f3   :  { %v972_v63 = vadd.f32 %v968_v62, %v895_v61  ;;  %v1199_v0 = vpop.f32.mrf.mxu0 }
 0x1f4   :  { %v2151_v2 = vpop.f32.mrf.mxu1 }
 0x1f5   :  { %v2172_v3 = vpop.f32.mrf.mxu0  ;;  %v1049_v4 = vadd.f32 %v1045_v58, %v972_v63 }
 0x1f8   :  { %v1122_v5 = vpop.f32.mrf.mxu1 }
 0x1f9   :  { %v1126_v6 = vadd.f32 %v1122_v5, %v1049_v4  ;;  %v1353_v7 = vpop.f32.mrf.mxu0 }
 0x1fa   :  { %v2165_v8 = vpop.f32.mrf.mxu1 }
 0x1fb   :  { %v2186_v9 = vpop.f32.mrf.mxu0  ;;  %v1203_v10 = vadd.f32 %v1199_v0, %v1126_v6 }
 0x1fe   :  { %v1276_v11 = vpop.f32.mrf.mxu1 }
 0x1ff   :  { %v1280_v12 = vadd.f32 %v1276_v11, %v1203_v10  ;;  %v1507_v13 = vpop.f32.mrf.mxu0 }
 0x200   :  { %v2179_v14 = vpop.f32.mrf.mxu1 }
 0x201   :  { %v2200_v15 = vpop.f32.mrf.mxu0  ;;  %v1357_v16 = vadd.f32 %v1353_v7, %v1280_v12 }
 0x204   :  { %v1430_v17 = vpop.f32.mrf.mxu1 }
 0x205   :  { %v1434_v18 = vadd.f32 %v1430_v17, %v1357_v16  ;;  %v1661_v19 = vpop.f32.mrf.mxu0 }
 0x206   :  { %v2193_v20 = vpop.f32.mrf.mxu1 }
 0x207   :  { %v2214_v21 = vpop.f32.mrf.mxu0  ;;  %v1511_v22 = vadd.f32 %v1507_v13, %v1434_v18 }
 0x208   :  { %v1584_v23 = vpop.f32.mrf.mxu1 }
 0x209   :  { %v1588_v24 = vadd.f32 %v1584_v23, %v1511_v22 }
 0x20a   :  { %v2207_v25 = vpop.f32.mrf.mxu1 }
 0x20b   :  { %v1665_v26 = vadd.f32 %v1661_v19, %v1588_v24 }
 0x20c   :  { %v1738_v27 = vpop.f32.mrf.mxu1 }
 0x20d   :  { %v1742_v29 = vadd.f32 %v1738_v27, %v1665_v26 }
 0x20e   :  { %v2221_v30 = vpop.f32.mrf.mxu1 }
 0x20f   :  { %v1750_v31 = vadd.f32 %v2028_v28, %v1742_v29 }
 0x211   :  { %v1751_v32 = vmax.f32 %v1750_v31, 0.0 }
 0x213   :  { %2253 = vmatmul.mubr.msk.f32.vlgmr.msra.gmra.mxu0 %vm1774_vm5, %v1751_v32 }
 0x2d3   :  { %v1844_v37 = vpop.f32.mrf.mxu0 }
 0x2d4   :  { %v1845_v38 = vadd.f32 %v2029_v36, %v1844_v37 }
 0x2d5   :  { %v2254_v39 = vpop.f32.mrf.mxu0 }
 0x2d6   :  { %v1848_v40 = vmax.f32 %v1845_v38, 0.0 }
 0x2d8   :  { %2278 = vmatmul.mubr.msk.f32.vlgmr.msra.gmra.mxu1 %vm1867_vm6, %v1848_v40 }
 0x398   :  { %v1941_v42 = vpop.f32.mrf.mxu1 }
 0x399   :  { %v1942_v1 = vadd.f32 %v2031_v41, %v1941_v42 }
 0x39a   :  { %v2279_v43 = vpop.f32.mrf.mxu1 }
 0x39b   :  { %1946 = vst.msk [vmem:[#allocation2] sm:$0x3] %vm1945_vm7, %v1942_v1 }
 0x39c   :  { %2294 = shalt.err (!%p2291_p4)
}
 0x39d   :  { %1956 = dma.vmem_to_hbm [thread:$0]  %s1954_s26, 32, %s3083_s12, [#allocation3]  }
 0x39e   :  { %2303 = dma.done.wait [#allocation3], 32  }
 0x39f   :  { %2304 = vsyncadd [#allocation3], 4294967264 }
 0x3a0   :  { %1960 = vsyncpa [#allocation3], 1 }

</bundles_post_ra>
